<compile_context>
chip_gen: v7x
topology: tpu7x:2x2x1
jax: 0.10.0
libtpu: 0.0.40
codegen_flags: <defaults>
</compile_context>

<pallas_src>
import functools

import jax
import jax.numpy as jnp
import numpy as np
from jax.experimental import pallas as pl
from jax.experimental.pallas import tpu as pltpu

_NEG = -1e9  # additive bias for padded key columns


def _attn_kernel(x_ref, wqkv_ref, bqkv_ref, relbias_ref, *rest,
                 num_heads, head_dim, mask_groups, flat_out):
    """One grid step == tb windows.

    x_ref      : (tb, S, C)   native dtype
    wqkv_ref   : (C, 3C)      native dtype, Q columns pre-scaled by D**-0.5
    bqkv_ref   : (1, 3C)      f32, Q part pre-scaled
    relbias_ref: (H, S, S)    native dtype, shared by every window (resident)
    mask_ref   : (m, S, S)    native dtype (optional, resident)
    o_ref      : (tb, S, C)   or (tb, 1, S*C) when flat_out
    ctx_ref    : (tb, S, C)   f32 VMEM scratch
    """
    if mask_groups is not None:
        mask_ref, o_ref, ctx_ref = rest
    else:
        mask_ref = None
        o_ref, ctx_ref = rest

    tb, s, c = x_ref.shape
    in_dtype = x_ref.dtype

    # Fused QKV projection: one MXU pass over all tb*S rows (free view since S
    # is sublane-aligned), f32 accumulate, then back to the input dtype so the
    # score / context matmuls hit the native (bf16) MXU path.
    x2d = x_ref[...].reshape(tb * s, c)
    qkv = jnp.dot(x2d, wqkv_ref[...], preferred_element_type=jnp.float32)
    qkv = qkv + bqkv_ref[...].astype(jnp.float32)             # (tb*S, 3C) f32
    qkv = qkv.astype(in_dtype).reshape(tb, s, 3 * c)

    rel = relbias_ref[...].astype(jnp.float32)                # (H, S, S)
    if mask_ref is not None:
        mask = mask_ref[...].astype(jnp.float32)              # (m, S, S)

    # Per-head attention, batched over the tb windows.
    # TODO(synk): heads are still a static Python unroll (per-head lane
    # slices); a single (tb*H)-batched dot_general needs an in-kernel
    # head-major relayout that is riskier to lower at these tiny head dims.
    for h in range(num_heads):
        lo = h * head_dim
        qh = qkv[:, :, lo:lo + head_dim]                      # (tb, S, D) pre-scaled
        kh = qkv[:, :, c + lo:c + lo + head_dim]              # (tb, S, D)
        vh = qkv[:, :, 2 * c + lo:2 * c + lo + head_dim]      # (tb, S, D)

        sc = jnp.einsum("bqd,bkd->bqk", qh, kh,
                        preferred_element_type=jnp.float32)   # (tb, S, S) f32
        sc = sc + rel[h]
        if mask_ref is not None:
            m = mask_groups
            # window index within the block == mask index (tb % m == 0 and the
            # block start is a multiple of m), leading-dim reshape is free.
            sc = (sc.reshape(tb // m, m, s, s) + mask[None]).reshape(tb, s, s)

        # NOTE: Swin uses finite (-100) additive masks; a fully -inf key row
        # (NaN risk) cannot occur with this module.
        sc = sc - jnp.max(sc, axis=-1, keepdims=True)
        p = jnp.exp(sc)
        p = p * pl.reciprocal(jnp.sum(p, axis=-1, keepdims=True), approx=True)

        ctx_ref[:, :, lo:lo + head_dim] = jnp.einsum(
            "bqk,bkd->bqd", p.astype(in_dtype), vh,
            preferred_element_type=jnp.float32)

    out = ctx_ref[...]
    if flat_out:                                              # lane-dense store
        out = out.reshape(tb, 1, s * c)
    o_ref[...] = out.astype(o_ref.dtype)


def relative_position_index(window_size):
    """Static Swin relative-position index, same recipe as the torch module."""
    wh, ww = window_size
    coords = np.stack(np.meshgrid(np.arange(wh), np.arange(ww), indexing="ij"))
    coords_flatten = coords.reshape(2, -1)                    # (2, N)
    rel = coords_flatten[:, :, None] - coords_flatten[:, None, :]
    rel = rel.transpose(1, 2, 0).copy()                       # (N, N, 2)
    rel[:, :, 0] += wh - 1
    rel[:, :, 1] += ww - 1
    rel[:, :, 0] *= 2 * ww - 1
    return rel.sum(-1)                                        # (N, N) int


def _vmem_estimate(tb, s_pad, c, num_heads, mask_groups, in_bytes, out_bytes):
    """Rough per-kernel VMEM footprint (bytes) for tb windows per grid step."""
    resident = 2 * (c * 3 * c * in_bytes                      # fused Wqkv
                    + 3 * c * 4                               # fused bias
                    + num_heads * s_pad * s_pad * in_bytes)   # rel-pos bias
    if mask_groups:
        resident += 2 * mask_groups * s_pad * s_pad * in_bytes
    stream = 2 * tb * s_pad * c * (in_bytes + out_bytes)      # x + out, dbl-buffered
    scratch = tb * s_pad * c * 4                              # f32 ctx scratch
    transient = (tb * s_pad * 3 * c * (4 + in_bytes)          # qkv f32 + cast
                 + 2 * tb * s_pad * s_pad * 4)                # scores + probs
    return resident + stream + scratch + transient


def _pick_block_windows(B, s_pad, c, num_heads, mask_groups, in_bytes,
                        out_bytes, budget):
    """Windows per grid step: VMEM-budgeted, <=2048 rows, grid >= 2 (even)."""
    cands = []
    for tb in range(1, B + 1):
        if B % tb:
            continue
        if mask_groups and tb % mask_groups:
            continue
        if _vmem_estimate(tb, s_pad, c, num_heads, mask_groups,
                          in_bytes, out_bytes) > budget:
            continue
        cands.append(tb)
    if not cands:
        cands = [mask_groups if (mask_groups and B % mask_groups == 0) else 1]
    multi = [tb for tb in cands if B // tb >= 2]        # keep both v7x TCs busy
    pool = multi if multi else cands
    good = [tb for tb in pool if tb * s_pad <= 2048] or [min(pool)]
    even = [tb for tb in good if (B // tb) % 2 == 0]
    return max(even) if even else max(good)


def donut_swin_self_attention(hidden_states, params, *, num_heads, window_size,
                              attention_mask=None, block_windows=None):
    """hidden_states: (B, S, C) with S == window_size[0]*window_size[1]."""
    B, S, C = hidden_states.shape
    assert C % num_heads == 0
    head_dim = C // num_heads
    scale = float(head_dim) ** -0.5
    dtype = hidden_states.dtype
    in_bytes = jnp.dtype(dtype).itemsize
    out_bytes = in_bytes

    wq, bq, wk, bk, wv, bv, rel_table = params

    # ---- fused, pre-scaled QKV weights --------------------------------------
    wqkv = jnp.concatenate([wq * scale, wk, wv], axis=1).astype(dtype)
    bqkv = jnp.concatenate([bq * scale, bk, bv]).reshape(1, 3 * C).astype(jnp.float32)

    # ---- sublane-pad the window-token dim ------------------------------------
    sub = {4: 8, 2: 16, 1: 32}.get(in_bytes, 8)
    s_pad = ((S + sub - 1) // sub) * sub
    x = hidden_states
    if s_pad != S:
        x = jnp.pad(x, ((0, 0), (0, s_pad - S), (0, 0)))

    # ---- relative-position bias, built ONCE as (H, S_pad, S_pad) -------------
    # Padded key columns get a large negative additive bias => ~0 probability.
    rpi = relative_position_index(window_size)                      # (S, S)
    rel_bias = rel_table[rpi.reshape(-1)].reshape(S, S, num_heads)  # (S, S, H)
    rel_bias = jnp.transpose(rel_bias, (2, 0, 1))                   # (H, S, S)
    if s_pad != S:
        rel_bias = jnp.pad(rel_bias,
                           ((0, 0), (0, s_pad - S), (0, s_pad - S)),
                           constant_values=_NEG)
    rel_bias = rel_bias.astype(dtype)

    # ---- attention mask kept at its ORIGINAL (m, S, S) shape -----------------
    mask_groups = None
    mask = None
    if attention_mask is not None:
        m = attention_mask.shape[0]
        # HF DonutSwin flattens windows as (B // m, m, ...): window b uses
        # mask[b % m]; requires the window count to be a multiple of m.
        assert B % m == 0, "batch*windows must be a multiple of the mask count"
        mask_groups = m
        mask = attention_mask
        if s_pad != S:
            mask = jnp.pad(mask, ((0, 0), (0, s_pad - S), (0, s_pad - S)))
        mask = mask.astype(dtype)

    # ---- windows per grid step, under a per-generation VMEM budget -----------
    try:
        vmem_cap = int(pltpu.get_tpu_info().vmem_capacity_bytes)
    except Exception:                                   # noqa: BLE001
        vmem_cap = 64 * 1024 * 1024                     # conservative (v7x / core)
    budget = int(vmem_cap * 0.75)

    if block_windows is None:
        tb = _pick_block_windows(B, s_pad, C, num_heads, mask_groups,
                                 in_bytes, out_bytes, budget)
    else:
        tb = block_windows
    assert B % tb == 0, "block_windows must divide the window count"
    if mask_groups is not None:
        assert tb % mask_groups == 0, \
            "block_windows must be a multiple of the mask count"

    est = _vmem_estimate(tb, s_pad, C, num_heads, mask_groups, in_bytes, out_bytes)
    vmem_limit = int(min(budget, max(2 * est, 32 * 1024 * 1024)))
    grid = (B // tb,)

    # ---- lane-dense output presentation for narrow channels ------------------
    flat_out = (C < 128) and ((s_pad * C) % 128 == 0)
    if flat_out:
        out_shape = jax.ShapeDtypeStruct((B, 1, s_pad * C), dtype)
        out_spec = pl.BlockSpec((tb, 1, s_pad * C), lambda b: (b, 0, 0))
    else:
        out_shape = jax.ShapeDtypeStruct((B, s_pad, C), dtype)
        out_spec = pl.BlockSpec((tb, s_pad, C), lambda b: (b, 0, 0))

    args = [x, wqkv, bqkv, rel_bias]
    in_specs = [
        pl.BlockSpec((tb, s_pad, C), lambda b: (b, 0, 0)),              # x
        pl.BlockSpec((C, 3 * C), lambda b: (0, 0)),                     # Wqkv (resident)
        pl.BlockSpec((1, 3 * C), lambda b: (0, 0)),                     # bias (resident)
        pl.BlockSpec((num_heads, s_pad, s_pad), lambda b: (0, 0, 0)),   # rel-pos bias
    ]
    if mask is not None:
        args.append(mask)
        in_specs.append(
            pl.BlockSpec((mask_groups, s_pad, s_pad), lambda b: (0, 0, 0)))

    kernel = functools.partial(
        _attn_kernel, num_heads=num_heads, head_dim=head_dim,
        mask_groups=mask_groups, flat_out=flat_out)

    out = pl.pallas_call(
        kernel,
        out_shape=out_shape,
        grid_spec=pltpu.PrefetchScalarGridSpec(
            num_scalar_prefetch=0,
            grid=grid,
            in_specs=in_specs,
            out_specs=out_spec,
            scratch_shapes=[pltpu.VMEM((tb, s_pad, C), jnp.float32)],
        ),
        compiler_params=pltpu.CompilerParams(
            dimension_semantics=("parallel",),
            vmem_limit_bytes=vmem_limit),
    )(*args)

    out = out.reshape(B, s_pad, C)
    if s_pad != S:
        out = out[:, :S, :]
    return out


def reference(hidden_states, params, *, num_heads, window_size,
              attention_mask=None):
    """Pure-JAX reference of the torch forward (fused_attn path)."""
    B, S, C = hidden_states.shape
    head_dim = C // num_heads
    scale = float(head_dim) ** -0.5
    wq, bq, wk, bk, wv, bv, rel_table = params

    q = hidden_states @ wq + bq
    k = hidden_states @ wk + bk
    v = hidden_states @ wv + bv

    def split_heads(t):
        return t.reshape(B, S, num_heads, head_dim).transpose(0, 2, 1, 3)

    q, k, v = split_heads(q), split_heads(k), split_heads(v)

    rpi = relative_position_index(window_size)
    bias = rel_table[rpi.reshape(-1)].reshape(S, S, num_heads)
    bias = jnp.transpose(bias, (2, 0, 1))[None]                     # (1, H, S, S)
    scores = jnp.einsum("bhqd,bhkd->bhqk", q, k) * scale + bias
    if attention_mask is not None:
        m = attention_mask.shape[0]
        mask_per_b = jnp.broadcast_to(
            attention_mask[None, :, None, :, :], (B // m, m, num_heads, S, S)
        ).reshape(B, num_heads, S, S)
        scores = scores + mask_per_b
    probs = jax.nn.softmax(scores, axis=-1)
    ctx = jnp.einsum("bhqk,bhkd->bhqd", probs, v)                   # (B, H, S, D)
    return ctx.transpose(0, 2, 1, 3).reshape(B, S, C)


if __name__ == "__main__":
    # Small, module-consistent shapes:
    #   window 4x4 -> S (`dim` in torch code) = 16 tokens per window
    #   num_heads=4, all_head_size=32 -> head_dim=8, 8 windows.
    window_size = (4, 4)
    num_heads = 4
    C = 32
    B = 8
    S = window_size[0] * window_size[1]

    key = jax.random.PRNGKey(0)
    keys = jax.random.split(key, 9)
    wq = jax.random.normal(keys[0], (C, C), jnp.float32) * 0.1
    wk = jax.random.normal(keys[1], (C, C), jnp.float32) * 0.1
    wv = jax.random.normal(keys[2], (C, C), jnp.float32) * 0.1
    bq = jax.random.normal(keys[3], (C,), jnp.float32) * 0.05
    bk = jax.random.normal(keys[4], (C,), jnp.float32) * 0.05
    bv = jax.random.normal(keys[5], (C,), jnp.float32) * 0.05
    # torch initializes the table to zeros; use random values so the rel-pos
    # bias path is actually exercised.
    rel_table = jax.random.normal(
        keys[6], ((2 * window_size[0] - 1) * (2 * window_size[1] - 1), num_heads),
        jnp.float32) * 0.1
    params = (wq, bq, wk, bk, wv, bv, rel_table)

    hidden_states = jax.random.normal(keys[7], (B, S, C), jnp.float32)
    attention_mask = jax.random.normal(keys[8], (2, S, S), jnp.float32) * 0.5

    # TODO(synk): attention dropout is an inference no-op; head_mask /
    # output_attentions paths (unused by the fused_attn branch) are not ported.

    # --- no-mask path ---------------------------------------------------------
    out = donut_swin_self_attention(
        hidden_states, params, num_heads=num_heads, window_size=window_size)
    out = jax.block_until_ready(out)
    ref = reference(hidden_states, params, num_heads=num_heads,
                    window_size=window_size)
    assert out.shape == (B, S, C)
    # tolerance loosened from 1e-5 only for the EUP approximate reciprocal
    np.testing.assert_allclose(np.asarray(out), np.asarray(ref),
                               rtol=2e-3, atol=2e-3)

    # --- masked (shifted-window) path -----------------------------------------
    out_m = donut_swin_self_attention(
        hidden_states, params, num_heads=num_heads, window_size=window_size,
        attention_mask=attention_mask)
    out_m = jax.block_until_ready(out_m)
    ref_m = reference(hidden_states, params, num_heads=num_heads,
                      window_size=window_size, attention_mask=attention_mask)
    np.testing.assert_allclose(np.asarray(out_m), np.asarray(ref_m),
                               rtol=2e-3, atol=2e-3)

    # --- non-sublane-aligned window (exercises S padding) ----------------------
    ws5 = (5, 5)
    S5 = ws5[0] * ws5[1]
    rel_table5 = jax.random.normal(
        keys[6], ((2 * ws5[0] - 1) * (2 * ws5[1] - 1), num_heads),
        jnp.float32) * 0.1
    params5 = (wq, bq, wk, bk, wv, bv, rel_table5)
    hs5 = jax.random.normal(keys[7], (4, S5, C), jnp.float32)
    out5 = donut_swin_self_attention(
        hs5, params5, num_heads=num_heads, window_size=ws5)
    out5 = jax.block_until_ready(out5)
    ref5 = reference(hs5, params5, num_heads=num_heads, window_size=ws5)
    np.testing.assert_allclose(np.asarray(out5), np.asarray(ref5),
                               rtol=2e-3, atol=2e-3)

    # --- bf16 path (native-dtype MXU score/context matmuls) --------------------
    hs_bf16 = hidden_states.astype(jnp.bfloat16)
    out_bf = donut_swin_self_attention(
        hs_bf16, params, num_heads=num_heads, window_size=window_size,
        attention_mask=attention_mask)
    out_bf = jax.block_until_ready(out_bf)
    ref_bf = reference(hs_bf16.astype(jnp.float32), params, num_heads=num_heads,
                       window_size=window_size, attention_mask=attention_mask)
    np.testing.assert_allclose(np.asarray(out_bf.astype(jnp.float32)),
                               np.asarray(ref_bf), rtol=5e-2, atol=5e-2)

    print("KERNEL_OK")
</pallas_src>

<mosaic_0001>
module attributes {stable_mosaic.version = 11 : i64} {
  func.func @_attn_kernel(%arg0: i32, %arg1: memref<4x16x32xf32, #tpu.memory_space<vmem>>, %arg2: memref<32x96xf32, #tpu.memory_space<vmem>>, %arg3: memref<1x96xf32, #tpu.memory_space<vmem>>, %arg4: memref<4x16x16xf32, #tpu.memory_space<vmem>>, %arg5: memref<4x1x512xf32, #tpu.memory_space<vmem>>, %arg6: memref<4x16x32xf32, #tpu.memory_space<vmem>>) attributes {dimension_semantics = [#tpu.dimension_semantics<parallel>], iteration_bounds = array<i64: 2>, scalar_prefetch = 0 : i64, scratch_operands = 1 : i64, tpu.core_type = #tpu.core_type<tc>, window_params = [{transform_indices = @transform_0, window_bounds = array<i64: 4, 16, 32>}, {pipeline_mode = #tpu.pipeline_mode<synchronous>, transform_indices = @transform_1, window_bounds = array<i64: 32, 96>}, {pipeline_mode = #tpu.pipeline_mode<synchronous>, transform_indices = @transform_2, window_bounds = array<i64: 1, 96>}, {pipeline_mode = #tpu.pipeline_mode<synchronous>, transform_indices = @transform_3, window_bounds = array<i64: 4, 16, 16>}, {transform_indices = @transform_4, window_bounds = array<i64: 4, 1, 512>}]} {
    %c0 = arith.constant 0 : index
    %c0_0 = arith.constant 0 : index
    %c0_1 = arith.constant 0 : index
    %0 = vector.load %arg1[%c0, %c0_0, %c0_1] : memref<4x16x32xf32, #tpu.memory_space<vmem>>, vector<4x16x32xf32>
    %1 = vector.shape_cast %0 : vector<4x16x32xf32> to vector<64x32xf32>
    %c0_2 = arith.constant 0 : index
    %c0_3 = arith.constant 0 : index
    %2 = vector.load %arg2[%c0_2, %c0_3] : memref<32x96xf32, #tpu.memory_space<vmem>>, vector<32x96xf32>
    %cst = arith.constant dense<0.000000e+00> : vector<64x96xf32>
    %3 = tpu.matmul %1, %2, %cst {dimension_numbers = #tpu.dot_dimension_numbers<[1], [0], [0], [1], [0, 0, 1, 1], [], []>} : vector<64x32xf32>, vector<32x96xf32>, vector<64x96xf32> -> vector<64x96xf32>
    %c0_4 = arith.constant 0 : index
    %c0_5 = arith.constant 0 : index
    %4 = vector.load %arg3[%c0_4, %c0_5] : memref<1x96xf32, #tpu.memory_space<vmem>>, vector<1x96xf32>
    %5 = vector.broadcast %4 : vector<1x96xf32> to vector<64x96xf32>
    %6 = arith.addf %3, %5 : vector<64x96xf32>
    %7 = vector.shape_cast %6 : vector<64x96xf32> to vector<4x16x96xf32>
    %c0_6 = arith.constant 0 : index
    %c0_7 = arith.constant 0 : index
    %c0_8 = arith.constant 0 : index
    %8 = vector.load %arg4[%c0_6, %c0_7, %c0_8] : memref<4x16x16xf32, #tpu.memory_space<vmem>>, vector<4x16x16xf32>
    %9 = vector.extract_strided_slice %7 {offsets = [0, 0, 0], sizes = [4, 16, 8], strides = [1, 1, 1]} : vector<4x16x96xf32> to vector<4x16x8xf32>
    %10 = vector.extract_strided_slice %7 {offsets = [0, 0, 32], sizes = [4, 16, 8], strides = [1, 1, 1]} : vector<4x16x96xf32> to vector<4x16x8xf32>
    %11 = vector.extract_strided_slice %7 {offsets = [0, 0, 64], sizes = [4, 16, 8], strides = [1, 1, 1]} : vector<4x16x96xf32> to vector<4x16x8xf32>
    "tpu.trace_start"() <{level = 10 : i32, message = "bqd,bkd->bqk"}> : () -> ()
    %cst_9 = arith.constant dense<0.000000e+00> : vector<4x16x16xf32>
    %12 = tpu.matmul %9, %10, %cst_9 {dimension_numbers = #tpu.dot_dimension_numbers<[2], [2], [1], [1], [0, 0, 0, 1, 1, 1], [0], [0]>} : vector<4x16x8xf32>, vector<4x16x8xf32>, vector<4x16x16xf32> -> vector<4x16x16xf32>
    "tpu.trace_stop"() : () -> ()
    %13 = vector.extract_strided_slice %8 {offsets = [0, 0, 0], sizes = [1, 16, 16], strides = [1, 1, 1]} : vector<4x16x16xf32> to vector<1x16x16xf32>
    %14 = vector.shape_cast %13 : vector<1x16x16xf32> to vector<16x16xf32>
    %15 = vector.shape_cast %14 : vector<16x16xf32> to vector<1x16x16xf32>
    %16 = vector.broadcast %15 : vector<1x16x16xf32> to vector<4x16x16xf32>
    %17 = arith.addf %12, %16 : vector<4x16x16xf32>
    %cst_10 = arith.constant dense<0xFF800000> : vector<4x16xf32>
    %18 = vector.multi_reduction <maximumf>, %17, %cst_10 [2] : vector<4x16x16xf32> to vector<4x16xf32>
    %19 = vector.shape_cast %18 : vector<4x16xf32> to vector<4x16x1xf32>
    %20 = vector.broadcast %19 : vector<4x16x1xf32> to vector<4x16x16xf32>
    %21 = arith.subf %17, %20 : vector<4x16x16xf32>
    %22 = math.exp %21 : vector<4x16x16xf32>
    %cst_11 = arith.constant dense<0.000000e+00> : vector<4x16xf32>
    %23 = vector.multi_reduction <add>, %22, %cst_11 [2] : vector<4x16x16xf32> to vector<4x16xf32>
    %24 = vector.shape_cast %23 : vector<4x16xf32> to vector<4x16x1xf32>
    %25 = tpu.reciprocal %24 {approx = true} : vector<4x16x1xf32> -> vector<4x16x1xf32>
    %26 = vector.broadcast %25 : vector<4x16x1xf32> to vector<4x16x16xf32>
    %27 = arith.mulf %22, %26 : vector<4x16x16xf32>
    "tpu.trace_start"() <{level = 10 : i32, message = "bqk,bkd->bqd"}> : () -> ()
    %cst_12 = arith.constant dense<0.000000e+00> : vector<4x16x8xf32>
    %28 = tpu.matmul %27, %11, %cst_12 {dimension_numbers = #tpu.dot_dimension_numbers<[2], [1], [1], [2], [0, 0, 0, 1, 1, 2], [0], [0]>} : vector<4x16x16xf32>, vector<4x16x8xf32>, vector<4x16x8xf32> -> vector<4x16x8xf32>
    "tpu.trace_stop"() : () -> ()
    %c0_13 = arith.constant 0 : index
    %c0_14 = arith.constant 0 : index
    %c0_15 = arith.constant 0 : index
    %29 = vector.load %arg6[%c0_13, %c0_14, %c0_15] : memref<4x16x32xf32, #tpu.memory_space<vmem>>, vector<4x16x8xf32>
    tpu.vector_store %arg6[%c0_13, %c0_14, %c0_15], %28 {strides = array<i32>} : memref<4x16x32xf32, #tpu.memory_space<vmem>>, vector<4x16x8xf32>,
    %30 = vector.extract_strided_slice %7 {offsets = [0, 0, 8], sizes = [4, 16, 8], strides = [1, 1, 1]} : vector<4x16x96xf32> to vector<4x16x8xf32>
    %31 = vector.extract_strided_slice %7 {offsets = [0, 0, 40], sizes = [4, 16, 8], strides = [1, 1, 1]} : vector<4x16x96xf32> to vector<4x16x8xf32>
    %32 = vector.extract_strided_slice %7 {offsets = [0, 0, 72], sizes = [4, 16, 8], strides = [1, 1, 1]} : vector<4x16x96xf32> to vector<4x16x8xf32>
    "tpu.trace_start"() <{level = 10 : i32, message = "bqd,bkd->bqk"}> : () -> ()
    %cst_16 = arith.constant dense<0.000000e+00> : vector<4x16x16xf32>
    %33 = tpu.matmul %30, %31, %cst_16 {dimension_numbers = #tpu.dot_dimension_numbers<[2], [2], [1], [1], [0, 0, 0, 1, 1, 1], [0], [0]>} : vector<4x16x8xf32>, vector<4x16x8xf32>, vector<4x16x16xf32> -> vector<4x16x16xf32>
    "tpu.trace_stop"() : () -> ()
    %34 = vector.extract_strided_slice %8 {offsets = [1, 0, 0], sizes = [1, 16, 16], strides = [1, 1, 1]} : vector<4x16x16xf32> to vector<1x16x16xf32>
    %35 = vector.shape_cast %34 : vector<1x16x16xf32> to vector<16x16xf32>
    %36 = vector.shape_cast %35 : vector<16x16xf32> to vector<1x16x16xf32>
    %37 = vector.broadcast %36 : vector<1x16x16xf32> to vector<4x16x16xf32>
    %38 = arith.addf %33, %37 : vector<4x16x16xf32>
    %cst_17 = arith.constant dense<0xFF800000> : vector<4x16xf32>
    %39 = vector.multi_reduction <maximumf>, %38, %cst_17 [2] : vector<4x16x16xf32> to vector<4x16xf32>
    %40 = vector.shape_cast %39 : vector<4x16xf32> to vector<4x16x1xf32>
    %41 = vector.broadcast %40 : vector<4x16x1xf32> to vector<4x16x16xf32>
    %42 = arith.subf %38, %41 : vector<4x16x16xf32>
    %43 = math.exp %42 : vector<4x16x16xf32>
    %cst_18 = arith.constant dense<0.000000e+00> : vector<4x16xf32>
    %44 = vector.multi_reduction <add>, %43, %cst_18 [2] : vector<4x16x16xf32> to vector<4x16xf32>
    %45 = vector.shape_cast %44 : vector<4x16xf32> to vector<4x16x1xf32>
    %46 = tpu.reciprocal %45 {approx = true} : vector<4x16x1xf32> -> vector<4x16x1xf32>
    %47 = vector.broadcast %46 : vector<4x16x1xf32> to vector<4x16x16xf32>
    %48 = arith.mulf %43, %47 : vector<4x16x16xf32>
    "tpu.trace_start"() <{level = 10 : i32, message = "bqk,bkd->bqd"}> : () -> ()
    %cst_19 = arith.constant dense<0.000000e+00> : vector<4x16x8xf32>
    %49 = tpu.matmul %48, %32, %cst_19 {dimension_numbers = #tpu.dot_dimension_numbers<[2], [1], [1], [2], [0, 0, 0, 1, 1, 2], [0], [0]>} : vector<4x16x16xf32>, vector<4x16x8xf32>, vector<4x16x8xf32> -> vector<4x16x8xf32>
    "tpu.trace_stop"() : () -> ()
    %c0_20 = arith.constant 0 : index
    %c0_21 = arith.constant 0 : index
    %c8 = arith.constant 8 : index
    %50 = vector.load %arg6[%c0_20, %c0_21, %c8] : memref<4x16x32xf32, #tpu.memory_space<vmem>>, vector<4x16x8xf32>
    tpu.vector_store %arg6[%c0_20, %c0_21, %c8], %49 {strides = array<i32>} : memref<4x16x32xf32, #tpu.memory_space<vmem>>, vector<4x16x8xf32>,
    %51 = vector.extract_strided_slice %7 {offsets = [0, 0, 16], sizes = [4, 16, 8], strides = [1, 1, 1]} : vector<4x16x96xf32> to vector<4x16x8xf32>
    %52 = vector.extract_strided_slice %7 {offsets = [0, 0, 48], sizes = [4, 16, 8], strides = [1, 1, 1]} : vector<4x16x96xf32> to vector<4x16x8xf32>
    %53 = vector.extract_strided_slice %7 {offsets = [0, 0, 80], sizes = [4, 16, 8], strides = [1, 1, 1]} : vector<4x16x96xf32> to vector<4x16x8xf32>
    "tpu.trace_start"() <{level = 10 : i32, message = "bqd,bkd->bqk"}> : () -> ()
    %cst_22 = arith.constant dense<0.000000e+00> : vector<4x16x16xf32>
    %54 = tpu.matmul %51, %52, %cst_22 {dimension_numbers = #tpu.dot_dimension_numbers<[2], [2], [1], [1], [0, 0, 0, 1, 1, 1], [0], [0]>} : vector<4x16x8xf32>, vector<4x16x8xf32>, vector<4x16x16xf32> -> vector<4x16x16xf32>
    "tpu.trace_stop"() : () -> ()
    %55 = vector.extract_strided_slice %8 {offsets = [2, 0, 0], sizes = [1, 16, 16], strides = [1, 1, 1]} : vector<4x16x16xf32> to vector<1x16x16xf32>
    %56 = vector.shape_cast %55 : vector<1x16x16xf32> to vector<16x16xf32>
    %57 = vector.shape_cast %56 : vector<16x16xf32> to vector<1x16x16xf32>
    %58 = vector.broadcast %57 : vector<1x16x16xf32> to vector<4x16x16xf32>
    %59 = arith.addf %54, %58 : vector<4x16x16xf32>
    %cst_23 = arith.constant dense<0xFF800000> : vector<4x16xf32>
    %60 = vector.multi_reduction <maximumf>, %59, %cst_23 [2] : vector<4x16x16xf32> to vector<4x16xf32>
    %61 = vector.shape_cast %60 : vector<4x16xf32> to vector<4x16x1xf32>
    %62 = vector.broadcast %61 : vector<4x16x1xf32> to vector<4x16x16xf32>
    %63 = arith.subf %59, %62 : vector<4x16x16xf32>
    %64 = math.exp %63 : vector<4x16x16xf32>
    %cst_24 = arith.constant dense<0.000000e+00> : vector<4x16xf32>
    %65 = vector.multi_reduction <add>, %64, %cst_24 [2] : vector<4x16x16xf32> to vector<4x16xf32>
    %66 = vector.shape_cast %65 : vector<4x16xf32> to vector<4x16x1xf32>
    %67 = tpu.reciprocal %66 {approx = true} : vector<4x16x1xf32> -> vector<4x16x1xf32>
    %68 = vector.broadcast %67 : vector<4x16x1xf32> to vector<4x16x16xf32>
    %69 = arith.mulf %64, %68 : vector<4x16x16xf32>
    "tpu.trace_start"() <{level = 10 : i32, message = "bqk,bkd->bqd"}> : () -> ()
    %cst_25 = arith.constant dense<0.000000e+00> : vector<4x16x8xf32>
    %70 = tpu.matmul %69, %53, %cst_25 {dimension_numbers = #tpu.dot_dimension_numbers<[2], [1], [1], [2], [0, 0, 0, 1, 1, 2], [0], [0]>} : vector<4x16x16xf32>, vector<4x16x8xf32>, vector<4x16x8xf32> -> vector<4x16x8xf32>
    "tpu.trace_stop"() : () -> ()
    %c0_26 = arith.constant 0 : index
    %c0_27 = arith.constant 0 : index
    %c16 = arith.constant 16 : index
    %71 = vector.load %arg6[%c0_26, %c0_27, %c16] : memref<4x16x32xf32, #tpu.memory_space<vmem>>, vector<4x16x8xf32>
    tpu.vector_store %arg6[%c0_26, %c0_27, %c16], %70 {strides = array<i32>} : memref<4x16x32xf32, #tpu.memory_space<vmem>>, vector<4x16x8xf32>,
    %72 = vector.extract_strided_slice %7 {offsets = [0, 0, 24], sizes = [4, 16, 8], strides = [1, 1, 1]} : vector<4x16x96xf32> to vector<4x16x8xf32>
    %73 = vector.extract_strided_slice %7 {offsets = [0, 0, 56], sizes = [4, 16, 8], strides = [1, 1, 1]} : vector<4x16x96xf32> to vector<4x16x8xf32>
    %74 = vector.extract_strided_slice %7 {offsets = [0, 0, 88], sizes = [4, 16, 8], strides = [1, 1, 1]} : vector<4x16x96xf32> to vector<4x16x8xf32>
    "tpu.trace_start"() <{level = 10 : i32, message = "bqd,bkd->bqk"}> : () -> ()
    %cst_28 = arith.constant dense<0.000000e+00> : vector<4x16x16xf32>
    %75 = tpu.matmul %72, %73, %cst_28 {dimension_numbers = #tpu.dot_dimension_numbers<[2], [2], [1], [1], [0, 0, 0, 1, 1, 1], [0], [0]>} : vector<4x16x8xf32>, vector<4x16x8xf32>, vector<4x16x16xf32> -> vector<4x16x16xf32>
    "tpu.trace_stop"() : () -> ()
    %76 = vector.extract_strided_slice %8 {offsets = [3, 0, 0], sizes = [1, 16, 16], strides = [1, 1, 1]} : vector<4x16x16xf32> to vector<1x16x16xf32>
    %77 = vector.shape_cast %76 : vector<1x16x16xf32> to vector<16x16xf32>
    %78 = vector.shape_cast %77 : vector<16x16xf32> to vector<1x16x16xf32>
    %79 = vector.broadcast %78 : vector<1x16x16xf32> to vector<4x16x16xf32>
    %80 = arith.addf %75, %79 : vector<4x16x16xf32>
    %cst_29 = arith.constant dense<0xFF800000> : vector<4x16xf32>
    %81 = vector.multi_reduction <maximumf>, %80, %cst_29 [2] : vector<4x16x16xf32> to vector<4x16xf32>
    %82 = vector.shape_cast %81 : vector<4x16xf32> to vector<4x16x1xf32>
    %83 = vector.broadcast %82 : vector<4x16x1xf32> to vector<4x16x16xf32>
    %84 = arith.subf %80, %83 : vector<4x16x16xf32>
    %85 = math.exp %84 : vector<4x16x16xf32>
    %cst_30 = arith.constant dense<0.000000e+00> : vector<4x16xf32>
    %86 = vector.multi_reduction <add>, %85, %cst_30 [2] : vector<4x16x16xf32> to vector<4x16xf32>
    %87 = vector.shape_cast %86 : vector<4x16xf32> to vector<4x16x1xf32>
    %88 = tpu.reciprocal %87 {approx = true} : vector<4x16x1xf32> -> vector<4x16x1xf32>
    %89 = vector.broadcast %88 : vector<4x16x1xf32> to vector<4x16x16xf32>
    %90 = arith.mulf %85, %89 : vector<4x16x16xf32>
    "tpu.trace_start"() <{level = 10 : i32, message = "bqk,bkd->bqd"}> : () -> ()
    %cst_31 = arith.constant dense<0.000000e+00> : vector<4x16x8xf32>
    %91 = tpu.matmul %90, %74, %cst_31 {dimension_numbers = #tpu.dot_dimension_numbers<[2], [1], [1], [2], [0, 0, 0, 1, 1, 2], [0], [0]>} : vector<4x16x16xf32>, vector<4x16x8xf32>, vector<4x16x8xf32> -> vector<4x16x8xf32>
    "tpu.trace_stop"() : () -> ()
    %c0_32 = arith.constant 0 : index
    %c0_33 = arith.constant 0 : index
    %c24 = arith.constant 24 : index
    %92 = vector.load %arg6[%c0_32, %c0_33, %c24] : memref<4x16x32xf32, #tpu.memory_space<vmem>>, vector<4x16x8xf32>
    tpu.vector_store %arg6[%c0_32, %c0_33, %c24], %91 {strides = array<i32>} : memref<4x16x32xf32, #tpu.memory_space<vmem>>, vector<4x16x8xf32>,
    %c0_34 = arith.constant 0 : index
    %c0_35 = arith.constant 0 : index
    %c0_36 = arith.constant 0 : index
    %93 = vector.load %arg6[%c0_34, %c0_35, %c0_36] : memref<4x16x32xf32, #tpu.memory_space<vmem>>, vector<4x16x32xf32>
    %94 = vector.shape_cast %93 : vector<4x16x32xf32> to vector<4x1x512xf32>
    %c0_37 = arith.constant 0 : index
    %c0_38 = arith.constant 0 : index
    %c0_39 = arith.constant 0 : index
    %95 = vector.load %arg5[%c0_37, %c0_38, %c0_39] : memref<4x1x512xf32, #tpu.memory_space<vmem>>, vector<4x1x512xf32>
    tpu.vector_store %arg5[%c0_37, %c0_38, %c0_39], %94 {strides = array<i32>} : memref<4x1x512xf32, #tpu.memory_space<vmem>>, vector<4x1x512xf32>,
    return
  }
  func.func @transform_0(%arg0: i32) -> (i32, i32, i32) {
    %c0_i32 = arith.constant 0 : i32
    %c0_i32_0 = arith.constant 0 : i32
    %c0_i32_1 = arith.constant 0 : i32
    return %arg0, %c0_i32, %c0_i32_0 : i32, i32, i32
  }
  func.func @transform_1(%arg0: i32) -> (i32, i32) {
    %c0_i32 = arith.constant 0 : i32
    %c0_i32_0 = arith.constant 0 : i32
    %c0_i32_1 = arith.constant 0 : i32
    return %c0_i32, %c0_i32_0 : i32, i32
  }
  func.func @transform_2(%arg0: i32) -> (i32, i32) {
    %c0_i32 = arith.constant 0 : i32
    %c0_i32_0 = arith.constant 0 : i32
    %c0_i32_1 = arith.constant 0 : i32
    return %c0_i32, %c0_i32_0 : i32, i32
  }
  func.func @transform_3(%arg0: i32) -> (i32, i32, i32) {
    %c0_i32 = arith.constant 0 : i32
    %c0_i32_0 = arith.constant 0 : i32
    %c0_i32_1 = arith.constant 0 : i32
    %c0_i32_2 = arith.constant 0 : i32
    return %c0_i32, %c0_i32_0, %c0_i32_1 : i32, i32, i32
  }
  func.func @transform_4(%arg0: i32) -> (i32, i32, i32) {
    %c0_i32 = arith.constant 0 : i32
    %c0_i32_0 = arith.constant 0 : i32
    %c0_i32_1 = arith.constant 0 : i32
    return %arg0, %c0_i32, %c0_i32_0 : i32, i32, i32
  }
}

</mosaic_0001>

<bundles_post_ra>
// kernel: tpu_custom_call.1
= control target key start
LH: loop header
LB: loop body
LE: loop exit
PB: predicated region body
PF: predicated region fallthrough
CT: control target
= control target key end

     0   :  { %9 = vsyncpa [#allocation4], 0  ;;  %s7033_s0 = inlined_call_operand.hbm [shape: f32[8,16,32], index: 0, kind: input, shape index: {}]   ;;  %s7034_s1 = inlined_call_operand.hbm [shape: f32[32,96], index: 1, kind: input, shape index: {}]   ;;  %s7035_s2 = inlined_call_operand.vmem [shape: f32[1,96], index: 2, kind: input, shape index: {}]   ;;  %s7036_s3 = inlined_call_operand.hbm [shape: f32[4,16,16], index: 3, kind: input, shape index: {}]   ;;  %s7037_s4 = inlined_call_operand.hbm [shape: f32[8,1,512], index: 4, kind: output, shape index: {}]  }
   0x1   :  { %11 = vsyncpa [#allocation4 + $0x1], 0 }
   0x2   :  { %12 = vsyncpa [#allocation7], 0 }
   0x3   :  { %13 = vsyncpa [#allocation5], 0 }
   0x4   :  { %15 = vsyncpa [#allocation5 + $0x1], 0  ;;  %s5870_s15 = smov 0   ;;  %s5872_s16 = smov 0  }
   0x5   :  { %s5874_s17 = smov 0   ;;  %s5876_s18 = smov 0  }
   0x6 LB: > { %s5891_s19 = sadd.s32 4294967295, %s5817_s18   ;;  %s4603_s20 = sadd.s32 4294967294, %s5817_s18   ;;  %s5817_s18 = sphi %s5876_s18, %s7061_s18   ;;  %s5813_s17 = sphi %s5874_s17, %s7060_s17   ;;  %s5809_s16 = sphi %s5872_s16, %s7059_s16   ;;  %s5805_s15 = sphi %s5870_s15, %s7058_s15  }
   0x7   : > { %p41_p0 = scmp.ne.s32.totalorder %s5809_s16, %s5805_s15  ;;  %p7038_p1 = scmp.eq.s32.totalorder %s5891_s19, 0 }
   0x8   : > { %p134_p3 = scmp.eq.s32.totalorder %s4603_s20, 1  ;;  %p4604_p5 = scmp.ge.s32.totalorder %s5817_s18, 1 }
   0x9   : > { %p5900_p4 = por %p7038_p1, %p41_p0  ;;  %p141_p7 = scmp.lt.s32.totalorder %s5817_s18, 3 }
   0xa   : > { %p5905_p6 = por %p134_p3, %p41_p0  ;;  %s5819_s24 = smov [#allocation6]  }
   0xb   : > { %s7041_s21 = scalar_select %p5900_p4, 1, 0 }
   0xc   : > { %s7042_s22 = scalar_select %p5905_p6, 1, 0 }
   0xd   : > { %p5910_p8 = pnand %p4604_p5, %p141_p7  ;;  %s153_s25 = sshll.u32 %s5819_s24, 4  ;;  %s5914_s25 = int_to_ptr.vmem [resolvable:$true] %s153_s25 }
   0xe   : > { %s5820_s27 = smov [#allocation8]   ;;  %s5661_s5 = scalar_lea.hbm %s7034_s1, 512 }
   0xf   : > { %p5296_p9 = pneg %p5910_p8  ;;  %s169_s28 = sshll.u32 %s5820_s27, 4  ;;  %s5925_s28 = int_to_ptr.vmem [resolvable:$true] %s169_s28 }
  0x10   : > { %p5662_p12 = scmp.ne.s32.totalorder %s7034_s1, %s5661_s5  ;;  %p5668_p5 = scmp.lt.u32.totalorder %s5661_s5, %s7034_s1 }
  0x11   : > { %p5921_p11 = pnand %p5296_p9, %p7038_p1 }
  0x13   : > { %p5663_p13 = pneg %p5921_p11 }
  0x15   : > { %p5664_p0 = pnand %p5663_p13, %p5662_p12 }
  0x17   : > { %p5665_p3 = pneg %p5664_p0 }
  0x19   : > { %p5670_p7 = pnand %p5668_p5, %p5665_p3 }
  0x1b   : > { %5673 = shalt.err (!%p5670_p7)
}
  0x1c   : > { %s5674_s10 = scalar_lea.vmem %s5914_s25, 512  ;;  %p5682_p2 = scmp.lt.s32.totalorder %s5914_s25, %s5914_s25 }
  0x1d   : > { %p5675_p9 = scmp.ne.s32.totalorder %s5914_s25, %s5674_s10  ;;  %p5683_p12 = scmp.lt.s32.totalorder %s5674_s10, %s5674_s10 }
  0x1f   : > { %p5677_p10 = pnand %p5675_p9, %p5663_p13  ;;  %p5684_p0 = por %p5683_p12, %p5682_p2 }
  0x21   : > { %p5678_p1 = pneg %p5677_p10 }
  0x23   : > { %p5685_p6 = pnand %p5684_p0, %p5678_p1 }
  0x25   : > { %5688 = shalt.err (!%p5685_p6)
}
  0x26   : > { %s5821_s11 = smov 128   ;;  %s5822_s12 = smov 8  }
  0x27   : > { %5299 = dma.hbm_to_vmem [thread:$0]  (!%p5921_p11), %s7034_s1, 512, %s5914_s25, [#allocation7], %s5821_s11, %s5821_s11, %s5822_s12  }
  0x28   : > { %s5689_s27 = scalar_lea.hbm %s7036_s3, 1024 }
  0x29   : > { %p5690_p1 = scmp.ne.s32.totalorder %s7036_s3, %s5689_s27  ;;  %p5696_p10 = scmp.lt.u32.totalorder %s5689_s27, %s7036_s3 }
  0x2b   : > { %p5692_p2 = pnand %p5690_p1, %p5663_p13 }
  0x2d   : > { %p5693_p6 = pneg %p5692_p2 }
  0x2f   : > { %p5698_p3 = pnand %p5696_p10, %p5693_p6 }
  0x31   : > { %5701 = shalt.err (!%p5698_p3)
}
  0x32   : > { %s5702_s25 = scalar_lea.vmem %s5925_s28, 1024  ;;  %p5710_p12 = scmp.lt.s32.totalorder %s5925_s28, %s5925_s28 }
  0x33   : > { %p5703_p5 = scmp.ne.s32.totalorder %s5925_s28, %s5702_s25  ;;  %p5711_p0 = scmp.lt.s32.totalorder %s5702_s25, %s5702_s25 }
  0x35   : > { %p5705_p7 = pnand %p5703_p5, %p5663_p13  ;;  %p5712_p1 = por %p5711_p0, %p5710_p12 }
  0x37   : > { %p5706_p9 = pneg %p5705_p7 }
  0x39   : > { %p5713_p2 = pnand %p5712_p1, %p5706_p9 }
  0x3b   : > { %5716 = shalt.err (!%p5713_p2)
}
  0x3c   : > { %5302 = dma.hbm_to_vmem [thread:$0]  (!%p5921_p11), %s7036_s3, 1024, %s5925_s28, [#allocation7], %s5821_s11, %s5821_s11, %s5822_s12  }
  0x3d   : > { %s5986_s26 = sadd.s32 1, %s5817_s18   ;;  %s28_s9 = sadd.s32 1, %s5813_s17 }
  0x3e   : > { %s25_s10 = ssub.s32 %s5817_s18, %s5986_s26  ;;  %p35_p13 = scmp.ne.s32.totalorder %s5813_s17, %s5809_s16 }
  0x3f   : > { %p26_p6 = scmp.eq.s32.totalorder %s25_s10, 0  ;;  %p36_p10 = scmp.eq.s32.totalorder %s5817_s18, 0 }
  0x40   : > { %p7045_p3 = scmp.eq.s32.totalorder %s5891_s19, 1  ;;  %p5313_p7 = scmp.lt.s32.totalorder %s5817_s18, 2 }
  0x41   : > { %s6002_s14 = scalar_select %p26_p6, %s5813_s17, %s28_s9  }
  0x42   : > { %p5996_p5 = por %p7045_p3, %p35_p13  ;;  %p37_p9 = por %p36_p10, %p35_p13 }
  0x43   : > { %s183_s20 = sand.u32 1, %s5813_s17   ;;  %s4729_s28 = sshll.u32 %s5817_s18, 10 }
  0x44   : > { %s7046_s13 = scalar_select %p5996_p5, 1, 0 }
  0x45   : > { %s4608_s24 = sshll.u32 %s183_s20, 6  ;;  %s6009_s30 = scalar_lea.hbm %s7033_s0, %s4729_s28 }
  0x46   : > { %s187_s5 = scalar_lea.vmem [#allocation3], %s4608_s24  ;;  %p6013_p11 = pnand %p5313_p7, %p37_p9 }
  0x47   : > { %s195_s6 = sshll.u32 %s187_s5, 4  ;;  %s6017_s7 = scalar_lea.sflag [#allocation4], %s183_s20  ;;  %s6011_s6 = int_to_ptr.vmem [resolvable:$true] %s195_s6 }
  0x48   : > { %s5717_s8 = scalar_lea.hbm %s6009_s30, 1024  ;;  %p5719_p0 = pneg %p6013_p11 }
  0x49   : > { %p5718_p12 = scmp.ne.s32.totalorder %s6009_s30, %s5717_s8  ;;  %s5722_s24 = scalar_lea.hbm %s7033_s0, 2048 }
  0x4a   : > { %p5723_p13 = scmp.lt.u32.totalorder %s6009_s30, %s7033_s0  ;;  %p5724_p6 = scmp.lt.u32.totalorder %s5722_s24, %s5717_s8 }
  0x4b   : > { %p5720_p1 = pnand %p5719_p0, %p5718_p12  ;;  %p5726_p3 = scmp.lt.u32.totalorder %s5717_s8, %s6009_s30 }
  0x4c   : > { %p5725_p10 = por %p5724_p6, %p5723_p13 }
  0x4d   : > { %p5721_p2 = pneg %p5720_p1 }
  0x4e   : > { %p5727_p7 = por %p5726_p3, %p5725_p10 }
  0x50   : > { %p5728_p9 = pnand %p5727_p7, %p5721_p2 }
  0x52   : > { %5731 = shalt.err (!%p5728_p9)
}
  0x53   : > { %s5732_s20 = scalar_lea.vmem %s6011_s6, 1024  ;;  %s5823_s29 = smov [#allocation3]  }
  0x54   : > { %p5733_p12 = scmp.ne.s32.totalorder %s6011_s6, %s5732_s20  ;;  %s5737_s5 = sshll.u32 %s5823_s29, 4  ;;  %s5738_s5 = int_to_ptr.vmem [resolvable:$false] %s5737_s5 }
  0x55   : > { %s5739_s9 = scalar_lea.vmem %s5738_s5, 2048  ;;  %p5740_p4 = scmp.lt.s32.totalorder %s6011_s6, %s5738_s5 }
  0x56   : > { %p5735_p1 = pnand %p5733_p12, %p5719_p0  ;;  %p5741_p13 = scmp.lt.s32.totalorder %s5739_s9, %s5732_s20 }
  0x58   : > { %p5736_p5 = pneg %p5735_p1  ;;  %p5742_p6 = por %p5741_p13, %p5740_p4 }
  0x5a   : > { %p5743_p10 = pnand %p5742_p6, %p5736_p5 }
  0x5c   : > { %5746 = shalt.err (!%p5743_p10)
}
  0x5d   : > { %5306 = dma.hbm_to_vmem [thread:$0]  (!%p6013_p11), %s6009_s30, 1024, %s6011_s6, %s6017_s7, %s5821_s11, %s5821_s11, %s5822_s12  }
  0x5e   : > { %207 = sbr.rel (%p5910_p8) target bundleno = 3380 (0xd34), region = 36  ;;  %s6051_s8 = sand.u32 (!%p5910_p8), 1, %s5809_s16  }
  0x5f   : > { %s4613_s10 = sshll.u32 (!%p5910_p8), %s6051_s8, 6  ;;  %s210_s24 = scalar_lea.sflag (!%p5910_p8), [#allocation4], %s6051_s8 }
  0x60   : > { %s213_s28 = scalar_lea.vmem (!%p5910_p8), [#allocation3], %s4613_s10  ;;  %p7048_p4 = scmp.ne.s32.totalorder (!%p5910_p8), %s7041_s21, 0 }
  0x65   : > { %5792 = dma.done.wait (%p7048_p4), %s210_s24, 1024  }
  0x66   : > { %5794 = vsyncadd (%p7048_p4), %s210_s24, 4294966272  ;;  %p7049_p5 = scmp.eq.s32.totalorder %s5891_s19, 0 }
  0x68   : > { %5796 = dma.done.wait (%p7049_p5), [#allocation7], 1536   ;;  %p7050_p11 = pmov %p7049_p5 }
  0x69   : > { %vm267_vm0 = vcmask 261120   ;;  %v256_v0 = vld [vmem:[#allocation6] sm:$0xff]  ;;  %v257_v1 = vld [vmem:[#allocation6 + $0x8] sm:$0xff]  ;;  %v258_v2 = vld [vmem:[#allocation6 + $0x10] sm:$0xff]  ;;  %vm411_vm1 = vcmask 64512   ;;  %s5824_s11 = smov 96  }
  0x6a   : > { %5798 = vsyncadd (%p7050_p11), [#allocation7], 4294965760  ;;  %v5116_v3 = vpack.c.bf16 %v257_v1, %v256_v0  ;;  %v259_v4 = vld [vmem:[#allocation6 + $0x18] sm:$0xff]  ;;  %v248_v5 = vld [vmem:[%s213_s28] sm:$0xff]  ;;  %s5825_s12 = smov 64   ;;  %vm762_vm3 = vcmask 130048  }
  0x6b   : > { %v5120_v6 = vpack.c.bf16 %v259_v4, %v258_v2  ;;  %4880 = vmatprep.mubr.msk.f32.mxu0 %vm267_vm0, %v248_v5  ;;  %v249_v7 = vld [vmem:[%s213_s28 + $0x8] sm:$0xff]  ;;  %v250_v8 = vld [vmem:[%s213_s28 + $0x10] sm:$0xff]  ;;  %v251_v9 = vld [vmem:[%s213_s28 + $0x18] sm:$0xff]  ;;  %s5826_s30 = smov 88   ;;  %s5827_s6 = smov 120   ;;  %vm2039_vm4 = vcmask 130112  }
  0x6c   : > { %5117 = vmatprep.subr.bf16.mxu0 %v5116_v3  ;;  %v252_v10 = vld [vmem:[%s213_s28 + $0x20] sm:$0xff]  ;;  %v253_v11 = vld [vmem:[%s213_s28 + $0x28] sm:$0xff]  ;;  %v254_v12 = vld [vmem:[%s213_s28 + $0x30] sm:$0xff]  ;;  %s5828_s25 = smov 56   ;;  %s5829_s7 = smov 80   ;;  %vm2880_vm5 = vcmask 195712  }
  0x6d   : > { %5119 = vmatpush3.bf16.msra.mxu0 %v5116_v3  ;;  %v255_v13 = vld [vmem:[%s213_s28 + $0x38] sm:$0xff]  ;;  %v4617_v14 = vld [vmem:[%s7035_s2] ss:$0 sm:$0xff]  ;;  %vm6128_vm2 = vmpackc.low %vm411_vm1, %vm411_vm1  ;;  %s5830_s27 = smov 112   ;;  %s5831_s20 = smov 48   ;;  %vm3721_vm6 = vcmask 261312  }
  0x6e   : > { %5121 = vmatprep.subr.bf16.mxu0 %v5120_v6  ;;  %v398_v4 = vld [vmem:[#allocation8 + $0x8] sm:$0xff]  ;;  %s5832_s29 = smov 72   ;;  %s5833_s5 = smov 104   ;;  %vm4326_vm7 = vcmask 523264   ;;  %vm4331_vm8 = vcmask 785408  }
  0x6f   : > { %s5834_s9 = smov 40   ;;  %s5835_s10 = smov 8  }
  0x70   : > { %s5836_s24 = smov 16   ;;  %s5837_s28 = smov 24  }
  0x71   : > { %5123 = vmatpush3.bf16.msra.mxu0 %v5120_v6  ;;  %v397_v6 = vld [vmem:[#allocation8] sm:$0xff]  ;;  %s5841_s21 = smov 32   ;;  %s4616_s23 = sshll.u32 %s6051_s8, 4 }
  0x72   : > { %p7055_p0 = scmp.ne.s32.totalorder %s7046_s13, 0 }
  0x74   : > { %4881 = vmatmul.mubr.msk.f32.vlgmr.msra.gmra.mrb[0].mxu0 %vm267_vm0, %v249_v7 }
  0x75   : > { %4883 = vmatprep.mubr.msk.f32.mxu0 %vm267_vm0, %v250_v8 }
  0x78   : > { %4884 = vmatmul.mubr.msk.f32.gmra.mrb[2].mxu0 %vm267_vm0, %v251_v9 }
  0x79   : > { %4886 = vmatprep.mubr.msk.f32.mxu0 %vm267_vm0, %v252_v10 }
  0x7c   : > { %4887 = vmatmul.mubr.msk.f32.gmra.mrb[4].mxu0 %vm267_vm0, %v253_v11 }
  0x7d   : > { %4889 = vmatprep.mubr.msk.f32.mxu0 %vm267_vm0, %v254_v12 }
  0x80   : > { %4890 = vmatmul.mubr.msk.f32.gmra.mrb[6].mxu0 %vm267_vm0, %v255_v13 }
 0x147   : > { %v4882_v15 = vpop.f32.mrb[0].mxu0 }
 0x148   : > { %v6074_v16 = vadd.f32 %v4882_v15, %v4617_v14  ;;  %v358_v17 = vpop.f32.mrb[1].mxu0 }
 0x149   : > { %v6076_v18 = vadd.f32 %v4617_v14, %v358_v17 }
 0x14b   : > { %v4885_v19 = vpop.f32.mrb[2].mxu0  ;;  %4896 = vmatprep.mubr.msk.f32.mxu1 %vm411_vm1, %v6076_v18  ;;  %v6082_v20 = vpack.i.bf16 %v6074_v16, %v6076_v18 }
 0x14c   : > { %v6084_v21 = vadd.f32 %v4885_v19, %v4617_v14  ;;  %v368_v22 = vpop.f32.mrb[3].mxu0 }
 0x14d   : > { %v6086_v23 = vadd.f32 %v4617_v14, %v368_v22  ;;  %5374 = vrot.lane.b32.xlu0 %v6082_v20, %s5824_s11 }
 0x14f   : > { %v4888_v24 = vpop.f32.mrb[4].mxu0  ;;  %v6092_v25 = vpack.i.bf16 %v6084_v21, %v6086_v23 }
 0x150   : > { %v6094_v26 = vadd.f32 %v4888_v24, %v4617_v14  ;;  %v378_v27 = vpop.f32.mrb[5].mxu0 }
 0x151   : > { %v6096_v28 = vadd.f32 %v4617_v14, %v378_v27  ;;  %5379 = vrot.lane.b32.xlu0 %v6092_v25, %s5824_s11 }
 0x153   : > { %v4891_v29 = vpop.f32.mrb[6].mxu0  ;;  %4910 = vmatprep.mubr.msk.f32.mxu0 %vm411_vm1, %v6096_v28  ;;  %v6104_v30 = vpack.i.bf16 %v6094_v26, %v6096_v28 }
 0x154   : > { %v6106_v31 = vadd.f32 %v4891_v29, %v4617_v14  ;;  %v388_v32 = vpop.f32.mrb[7].mxu0 }
 0x155   : > { %v6108_v33 = vadd.f32 %v4617_v14, %v388_v32  ;;  %5384 = vrot.lane.b32.xlu1 %v6104_v30, %s5824_s11  ;;  %5399 = vrot.lane.b32.xlu0 %v6092_v25, %s5825_s12 }
 0x157   : > { %v6116_v34 = vpack.i.bf16 %v6106_v31, %v6108_v33 }
 0x159   : > { %5389 = vrot.lane.b32.xlu1 %v6116_v34, %s5824_s11 }
 0x15d   : > { %5394 = vrot.lane.b32.xlu1 %v6082_v20, %s5825_s12 }
 0x161   : > { %5404 = vrot.lane.b32.xlu1 %v6104_v30, %s5825_s12 }
 0x165   : > { %5409 = vrot.lane.b32.xlu1 %v6116_v34, %s5825_s12 }
 0x1bf   : > { %v5375_v35 = vpop.permute.xlu0 %5374 }
 0x1c0   : > { %v5377_v36 = vunpack.i.h.bf16 %v5375_v35  ;;  %v5376_v37 = vunpack.i.l.bf16 %v5375_v35 }
 0x1c2   : > { %v5124_v39 = vpack.c.bf16 %v5377_v36, %v5376_v37 }
 0x1c3   : > { %v5380_v40 = vpop.permute.xlu0 %5379 }
 0x1c4   : > { %v5382_v41 = vunpack.i.h.bf16 %v5380_v40  ;;  %v5381_v42 = vunpack.i.l.bf16 %v5380_v40  ;;  %5126 = vmatprep.subr.msk.bf16.mxu1 %vm6128_vm2, %v5124_v39 }
 0x1c5   : > { %5129 = vmatpush3.bf16.xpose.msk.msra.mxu1 %vm6128_vm2, %v5124_v39 }
 0x1c6   : > { %v5130_v43 = vpack.c.bf16 %v5382_v41, %v5381_v42 }
 0x1c7   : > { %v5385_v44 = vpop.permute.xlu1 %5384  ;;  %v5400_v51 = vpop.permute.xlu0 %5399 }
 0x1c8   : > { %v5387_v45 = vunpack.i.h.bf16 %v5385_v44  ;;  %v5386_v46 = vunpack.i.l.bf16 %v5385_v44  ;;  %5132 = vmatprep.subr.msk.bf16.mxu1 %vm6128_vm2, %v5130_v43  ;;  %v5402_v56 = vunpack.i.h.bf16 %v5400_v51  ;;  %v5401_v57 = vunpack.i.l.bf16 %v5400_v51 }
 0x1ca   : > { %v5136_v47 = vpack.c.bf16 %v5387_v45, %v5386_v46  ;;  %v5152_v62 = vpack.c.bf16 %v5402_v56, %v5401_v57 }
 0x1cb   : > { %v5390_v48 = vpop.permute.xlu1 %5389 }
 0x1cc   : > { %v5392_v49 = vunpack.i.h.bf16 %v5390_v48  ;;  %v5391_v50 = vunpack.i.l.bf16 %v5390_v48  ;;  %4897 = vmatmul.mubr.msk.f32.vlgmr.msra.gmra.mrb[0].mxu1 %vm411_vm1, %v6074_v16  ;;  %5138 = vmatprep.subr.msk.bf16.mxu0 %vm6128_vm2, %v5136_v47 }
 0x1cd   : > { %5135 = vmatpush3.bf16.xpose.msk.msra.mxu1 %vm6128_vm2, %v5130_v43  ;;  %4903 = vmatprep.mubr.msk.f32.mxu1 %vm411_vm1, %v6086_v23 }
 0x1ce   : > { %v5142_v52 = vpack.c.bf16 %v5392_v49, %v5391_v50  ;;  %5141 = vmatpush3.bf16.xpose.msk.msra.mxu0 %vm6128_vm2, %v5136_v47 }
 0x1cf   : > { %v5395_v53 = vpop.permute.xlu1 %5394 }
 0x1d0   : > { %v5397_v54 = vunpack.i.h.bf16 %v5395_v53  ;;  %v5396_v55 = vunpack.i.l.bf16 %v5395_v53  ;;  %5144 = vmatprep.subr.msk.bf16.mxu1 %vm6128_vm2, %v5142_v52 }
 0x1d2   : > { %v5148_v58 = vpack.c.bf16 %v5397_v54, %v5396_v55 }
 0x1d3   : > { %v5405_v59 = vpop.permute.xlu1 %5404 }
 0x1d4   : > { %v5407_v60 = vunpack.i.h.bf16 %v5405_v59  ;;  %v5406_v61 = vunpack.i.l.bf16 %v5405_v59  ;;  %4904 = vmatmul.mubr.msk.f32.vlgmr.msra.gmra.mrb[2].mxu1 %vm411_vm1, %v6084_v21  ;;  %5149 = vmatprep.subr.bf16.mxu0 %v5148_v58 }
 0x1d5   : > { %4911 = vmatmul.mubr.msk.f32.vlgmr.msra.gmra.mrb[8].mxu0 %vm411_vm1, %v6094_v26  ;;  %5147 = vmatpush3.bf16.xpose.msk.msra.mxu1 %vm6128_vm2, %v5142_v52 }
 0x1d6   : > { %4917 = vmatprep.mubr.msk.f32.mxu1 %vm411_vm1, %v6108_v33  ;;  %5151 = vmatpush3.bf16.msra.mxu0 %v5148_v58  ;;  %v6158_v63 = vpack.c.bf16 %v5407_v60, %v5406_v61 }
 0x1d7   : > { %5153 = vmatprep.subr.bf16.mxu1 %v5152_v62  ;;  %v5410_v0 = vpop.permute.xlu1 %5409 }
 0x1d8   : > { %5157 = vmatprep.subr.bf16.mxu0 %v6158_v63  ;;  %v5412_v1 = vunpack.i.h.bf16 %v5410_v0  ;;  %v5411_v2 = vunpack.i.l.bf16 %v5410_v0 }
 0x1da   : > { %v6161_v3 = vpack.c.bf16 %v5412_v1, %v5411_v2 }
 0x1dc   : > { %4918 = vmatmul.mubr.msk.f32.vlgmr.msra.gmra.mrb[4].mxu1 %vm411_vm1, %v6106_v31 }
 0x1dd   : > { %5155 = vmatpush3.bf16.msra.mxu1 %v5152_v62 }
 0x1de   : > { %5161 = vmatprep.subr.bf16.mxu1 %v6161_v3 }
 0x29f   : > { %v4898_v5 = vpop.f32.mrb[0].mxu1 }
 0x2a0   : > { %v492_v7 = vadd.f32 %v4898_v5, %v398_v4  ;;  %v486_v8 = vpop.f32.mrb[1].mxu1 }
 0x2a1   : > { %v487_v9 = vadd.f32 %v486_v8, %v397_v6 }
 0x2a2   : > { %v766_v10 = vsel %vm762_vm3, %v492_v7, -inf }
 0x2a3   : > { %767 = vmax.xlane.f32.xlu0 %v766_v10  ;;  %v763_v11 = vsel %vm762_vm3, %v487_v9, -inf }
 0x2a7   : > { %v4905_v12 = vpop.f32.mrb[2].mxu1  ;;  %764 = vmax.xlane.f32.xlu0 %v763_v11 }
 0x2a8   : > { %v581_v13 = vadd.f32 %v4905_v12, %v398_v4  ;;  %v4912_v14 = vpop.f32.mrb[8].mxu0  ;;  %v575_v15 = vpop.f32.mrb[3].mxu1 }
 0x2a9   : > { %v670_v17 = vadd.f32 %v4912_v14, %v398_v4  ;;  %v664_v19 = vpop.f32.mrb[9].mxu0  ;;  %v576_v24 = vadd.f32 %v575_v15, %v397_v6 }
 0x2aa   : > { %v772_v22 = vsel %vm762_vm3, %v581_v13, -inf  ;;  %v665_v29 = vadd.f32 %v664_v19, %v397_v6 }
 0x2ab   : > { %v778_v27 = vsel %vm762_vm3, %v670_v17, -inf  ;;  %773 = vmax.xlane.f32.xlu0 %v772_v22  ;;  %v769_v35 = vsel %vm762_vm3, %v576_v24, -inf }
 0x2ac   : > { %779 = vmax.xlane.f32.xlu1 %v778_v27  ;;  %v775_v41 = vsel %vm762_vm3, %v665_v29, -inf }
 0x2af   : > { %v4919_v32 = vpop.f32.mrb[4].mxu1 }
 0x2b0   : > { %v759_v36 = vadd.f32 %v4919_v32, %v398_v4  ;;  %770 = vmax.xlane.f32.xlu1 %v769_v35  ;;  %v753_v37 = vpop.f32.mrb[5].mxu1 }
 0x2b1   : > { %v754_v39 = vadd.f32 %v753_v37, %v397_v6 }
 0x2b2   : > { %v784_v40 = vsel %vm762_vm3, %v759_v36, -inf }
 0x2b3   : > { %785 = vmax.xlane.f32.xlu0 %v784_v40  ;;  %v781_v42 = vsel %vm762_vm3, %v754_v39, -inf }
 0x2b4   : > { %776 = vmax.xlane.f32.xlu1 %v775_v41 }
 0x2b7   : > { %782 = vmax.xlane.f32.xlu0 %v781_v42 }
 0x2c5   : > { %5419 = vrot.lane.b32.xlu1 %v6092_v25, %s5826_s30 }
 0x2cd   : > { %5414 = vrot.lane.b32.xlu0 %v6082_v20, %s5826_s30 }
 0x330   : > { %v768_v43 = vpop.xlane.xlu0 %767 }
 0x331   : > { %v788_v44 = vsub.f32 %v492_v7, %v768_v43 }
 0x333   : > { %v797_v45 = vmul.f32 1.442695, %v788_v44 }
 0x334   : > { %v765_v46 = vpop.xlane.xlu0 %764 }
 0x335   : > { %5533 = vpow2.f32 %v797_v45  ;;  %v787_v47 = vsub.f32 %v487_v9, %v765_v46 }
 0x337   : > { %v795_v48 = vmul.f32 1.442695, %v787_v47 }
 0x338   : > { %v774_v49 = vpop.xlane.xlu0 %773 }
 0x339   : > { %5535 = vpow2.f32 %v795_v48  ;;  %v780_v50 = vpop.xlane.xlu1 %779  ;;  %v790_v51 = vsub.f32 %v581_v13, %v774_v49 }
 0x33a   : > { %v792_v52 = vsub.f32 %v670_v17, %v780_v50 }
 0x33b   : > { %v801_v53 = vmul.f32 1.442695, %v790_v51 }
 0x33c   : > { %v805_v54 = vmul.f32 1.442695, %v792_v52 }
 0x33d   : > { %5537 = vpow2.f32 %v801_v53  ;;  %v771_v55 = vpop.xlane.xlu1 %770 }
 0x33e   : > { %5539 = vpow2.f32 %v805_v54  ;;  %v789_v56 = vsub.f32 %v576_v24, %v771_v55 }
 0x33f   : > { %v6178_v57 = vpop.eup %5533 }
 0x340   : > { %v799_v58 = vmul.f32 1.442695, %v789_v56  ;;  %v814_v59 = vsel %vm762_vm3, %v6178_v57, 0.0  ;;  %v786_v7 = vpop.xlane.xlu0 %785 }
 0x341   : > { %815 = vadd.xlane.f32.xlu1 %v814_v59  ;;  %v777_v6 = vpop.xlane.xlu1 %776  ;;  %v794_v10 = vsub.f32 %v759_v36, %v786_v7 }
 0x342   : > { %5541 = vpow2.f32 %v799_v58  ;;  %v791_v8 = vsub.f32 %v665_v29, %v777_v6 }
 0x343   : > { %v6182_v60 = vpop.eup %5535  ;;  %v809_v12 = vmul.f32 1.442695, %v794_v10 }
 0x344   : > { %v811_v61 = vsel %vm762_vm3, %v6182_v60, 0.0  ;;  %v803_v9 = vmul.f32 1.442695, %v791_v8  ;;  %v783_v11 = vpop.xlane.xlu0 %782 }
 0x345   : > { %812 = vadd.xlane.f32.xlu1 %v811_v61  ;;  %v793_v13 = vsub.f32 %v754_v39, %v783_v11  ;;  %v5420_v29 = vpop.permute.xlu1 %5419 }
 0x346   : > { %5543 = vpow2.f32 %v803_v9  ;;  %v5422_v49 = vunpack.i.h.bf16 %v5420_v29  ;;  %v5421_v50 = vunpack.i.l.bf16 %v5420_v29 }
 0x347   : > { %v6186_v62 = vpop.eup %5537  ;;  %5545 = vpow2.f32 %v809_v12  ;;  %v807_v14 = vmul.f32 1.442695, %v793_v13 }
 0x348   : > { %v6188_v0 = vpop.eup %5539  ;;  %v820_v1 = vsel %vm762_vm3, %v6186_v62, 0.0  ;;  %v5415_v35 = vpop.permute.xlu0 %5414  ;;  %v5170_v53 = vpack.c.bf16 %v5422_v49, %v5421_v50 }
 0x349   : > { %v826_v2 = vsel %vm762_vm3, %v6188_v0, 0.0  ;;  %821 = vadd.xlane.f32.xlu0 %v820_v1  ;;  %5547 = vpow2.f32 %v807_v14  ;;  %v5417_v42 = vunpack.i.h.bf16 %v5415_v35  ;;  %v5416_v43 = vunpack.i.l.bf16 %v5415_v35 }
 0x34a   : > { %827 = vadd.xlane.f32.xlu1 %v826_v2 }
 0x34b   : > { %v5164_v46 = vpack.c.bf16 %v5417_v42, %v5416_v43 }
 0x34c   : > { %v6194_v4 = vpop.eup %5541 }
 0x34d   : > { %v817_v5 = vsel %vm762_vm3, %v6194_v4, 0.0 }
 0x34e   : > { %818 = vadd.xlane.f32.xlu0 %v817_v5 }
 0x350   : > { %v6202_v15 = vpop.eup %5543 }
 0x351   : > { %v823_v17 = vsel %vm762_vm3, %v6202_v15, 0.0  ;;  %v6206_v19 = vpop.eup %5545 }
 0x352   : > { %v832_v22 = vsel %vm762_vm3, %v6206_v19, 0.0 }
 0x353   : > { %v6210_v24 = vpop.eup %5547 }
 0x354   : > { %v829_v27 = vsel %vm762_vm3, %v6210_v24, 0.0 }
 0x35b   : > { %1298 = vrot.lane.b32.xlu1 %v6086_v23, %s5827_s6 }
 0x364   : > { %1207 = vrot.lane.b32.xlu0 %v6076_v18, %s5827_s6 }
 0x37f   : > { %824 = vadd.xlane.f32.xlu1 %v823_v17 }
 0x383   : > { %833 = vadd.xlane.f32.xlu0 %v832_v22 }
 0x387   : > { %830 = vadd.xlane.f32.xlu0 %v829_v27 }
 0x390   : > { %5429 = vrot.lane.b32.xlu1 %v6116_v34, %s5826_s30 }
 0x394   : > { %1300 = vrot.lane.b32.xlu1 %v6084_v21, %s5827_s6 }
 0x398   : > { %1480 = vrot.lane.b32.xlu1 %v6108_v33, %s5827_s6 }
 0x39c   : > { %1482 = vrot.lane.b32.xlu1 %v6106_v31, %s5827_s6 }
 0x39d   : > { %5424 = vrot.lane.b32.xlu0 %v6104_v30, %s5826_s30  ;;  %s4731_s30 = sshll.u32 %s5891_s19, 8  ;;  %s5843_s19 = smov [#allocation9]  }
 0x3a0   : > { %5434 = vrot.lane.b32.xlu1 %v6082_v20, %s5828_s25 }
 0x3a1   : > { %1209 = vrot.lane.b32.xlu0 %v6074_v16, %s5827_s6 }
 0x3a4   : > { %5444 = vrot.lane.b32.xlu1 %v6104_v30, %s5828_s25 }
 0x3a5   : > { %1389 = vrot.lane.b32.xlu0 %v6096_v28, %s5827_s6 }
 0x3a8   : > { %5449 = vrot.lane.b32.xlu1 %v6116_v34, %s5828_s25 }
 0x3a9   : > { %1391 = vrot.lane.b32.xlu0 %v6094_v26, %s5827_s6 }
 0x3ad   : > { %5439 = vrot.lane.b32.xlu0 %v6092_v25, %s5828_s25 }
 0x3ce   : > { %v816_v32 = vpop.xlane.xlu1 %815 }
 0x3cf   : > { %5549 = vrcp.f32 %v816_v32 }
 0x3d2   : > { %v813_v36 = vpop.xlane.xlu1 %812 }
 0x3d3   : > { %5551 = vrcp.f32 %v813_v36 }
 0x3d6   : > { %v822_v37 = vpop.xlane.xlu0 %821 }
 0x3d7   : > { %5553 = vrcp.f32 %v822_v37 }
 0x3d9   : > { %v5550_v40 = vpop.eup %5549 }
 0x3da   : > { %v844_v45 = vmul.f32 %v5550_v40, %v6178_v57 }
 0x3db   : > { %v819_v39 = vpop.xlane.xlu0 %818 }
 0x3dc   : > { %5555 = vrcp.f32 %v819_v39 }
 0x3dd   : > { %v5552_v41 = vpop.eup %5551 }
 0x3de   : > { %v843_v44 = vmul.f32 %v5552_v41, %v6182_v60 }
 0x3df   : > { %v1208_v55 = vpop.permute.xlu0 %1207 }
 0x3e0   : > { %4924 = vmatprep.mubr.msk.f32.mxu0 %vm762_vm3, %v843_v44 }
 0x3e1   : > { %4925 = vmatmul.mubr.msk.f32.vlgmr.msra.gmra.mrb[10].mxu0 %vm762_vm3, %v844_v45  ;;  %v5554_v47 = vpop.eup %5553 }
 0x3e2   : > { %5159 = vmatpush3.bf16.msra.mxu0 %v6158_v63  ;;  %v846_v52 = vmul.f32 %v5554_v47, %v6186_v62  ;;  %v828_v63 = vpop.xlane.xlu1 %827 }
 0x3e3   : > { %5166 = vmatprep.subr.msk.bf16.mxu0 %vm6128_vm2, %v5164_v46  ;;  %5557 = vrcp.f32 %v828_v63 }
 0x3e6   : > { %v5556_v48 = vpop.eup %5555  ;;  %v1299_v54 = vpop.permute.xlu1 %1298 }
 0x3e7   : > { %v845_v51 = vmul.f32 %v5556_v48, %v6194_v4 }
 0x3e9   : > { %4931 = vmatprep.mubr.msk.f32.mxu1 %vm762_vm3, %v845_v51 }
 0x3ea   : > { %4932 = vmatmul.mubr.msk.f32.vlgmr.msra.gmra.mrb[6].mxu1 %vm762_vm3, %v846_v52 }
 0x3eb   : > { %5163 = vmatpush3.bf16.msra.mxu1 %v6161_v3 }
 0x3ec   : > { %5172 = vmatprep.subr.msk.bf16.mxu1 %vm6128_vm2, %v5170_v53 }
 0x3ed   : > { %v5558_v61 = vpop.eup %5557 }
 0x3ee   : > { %v848_v6 = vmul.f32 %v5558_v61, %v6188_v0 }
 0x40c   : > { %v825_v56 = vpop.xlane.xlu1 %824 }
 0x40d   : > { %5559 = vrcp.f32 %v825_v56 }
 0x410   : > { %v5430_v57 = vpop.permute.xlu1 %5429  ;;  %v834_v58 = vpop.xlane.xlu0 %833 }
 0x411   : > { %5561 = vrcp.f32 %v834_v58  ;;  %v5432_v12 = vunpack.i.h.bf16 %v5430_v57  ;;  %v5431_v13 = vunpack.i.l.bf16 %v5430_v57 }
 0x413   : > { %v5182_v32 = vpack.c.bf16 %v5432_v12, %v5431_v13 }
 0x414   : > { %v1301_v59 = vpop.permute.xlu1 %1300  ;;  %v831_v60 = vpop.xlane.xlu0 %830 }
 0x415   : > { %5563 = vrcp.f32 %v831_v60 }
 0x417   : > { %v5560_v62 = vpop.eup %5559 }
 0x418   : > { %v1481_v1 = vpop.permute.xlu1 %1480  ;;  %v5425_v2 = vpop.permute.xlu0 %5424  ;;  %v847_v3 = vmul.f32 %v5560_v62, %v6202_v15 }
 0x419   : > { %v5427_v4 = vunpack.i.h.bf16 %v5425_v2  ;;  %v5426_v5 = vunpack.i.l.bf16 %v5425_v2 }
 0x41a   : > { %4938 = vmatprep.mubr.msk.f32.mxu0 %vm762_vm3, %v847_v3 }
 0x41b   : > { %v5176_v7 = vpack.c.bf16 %v5427_v4, %v5426_v5  ;;  %4939 = vmatmul.mubr.msk.f32.vlgmr.msra.gmra.mrb[12].mxu0 %vm762_vm3, %v848_v6  ;;  %v5562_v10 = vpop.eup %5561 }
 0x41c   : > { %5169 = vmatpush3.bf16.xpose.msk.msra.mxu0 %vm6128_vm2, %v5164_v46  ;;  %v1483_v8 = vpop.permute.xlu1 %1482  ;;  %4952 = vmatprep.mubr.msk.f32.mxu0 %vm411_vm1, %v1208_v55  ;;  %v1210_v9 = vpop.permute.xlu0 %1209  ;;  %v850_v27 = vmul.f32 %v5562_v10, %v6206_v19  ;;  %v399_v55 = vld [vmem:[#allocation8 + $0x10] sm:$0xff] }
 0x41d   : > { %5178 = vmatprep.subr.msk.bf16.mxu0 %vm6128_vm2, %v5176_v7 }
 0x41f   : > { %v5564_v11 = vpop.eup %5563 }
 0x420   : > { %v5435_v0 = vpop.permute.xlu1 %5434  ;;  %v1390_v14 = vpop.permute.xlu0 %1389  ;;  %v849_v15 = vmul.f32 %v5564_v11, %v6210_v24 }
 0x421   : > { %v5437_v17 = vunpack.i.h.bf16 %v5435_v0  ;;  %v5436_v22 = vunpack.i.l.bf16 %v5435_v0 }
 0x422   : > { %4945 = vmatprep.mubr.msk.f32.mxu1 %vm762_vm3, %v849_v15 }
 0x423   : > { %4953 = vmatmul.mubr.msk.f32.vlgmr.msra.gmra.mrb[14].mxu0 %vm411_vm1, %v1210_v9  ;;  %4946 = vmatmul.mubr.msk.f32.vlgmr.msra.gmra.mrb[8].mxu1 %vm762_vm3, %v850_v27  ;;  %v5188_v29 = vpack.c.bf16 %v5437_v17, %v5436_v22 }
 0x424   : > { %5175 = vmatpush3.bf16.xpose.msk.msra.mxu1 %vm6128_vm2, %v5170_v53  ;;  %5181 = vmatpush3.bf16.xpose.msk.msra.mxu0 %vm6128_vm2, %v5176_v7  ;;  %v1392_v35 = vpop.permute.xlu0 %1391  ;;  %v5445_v24 = vpop.permute.xlu1 %5444  ;;  %v400_v53 = vld [vmem:[#allocation8 + $0x18] sm:$0xff] }
 0x425   : > { %4966 = vmatprep.mubr.msk.f32.mxu0 %vm411_vm1, %v1390_v14  ;;  %4959 = vmatprep.mubr.msk.f32.mxu1 %vm411_vm1, %v1299_v54  ;;  %v5447_v19 = vunpack.i.h.bf16 %v5445_v24  ;;  %v5446_v36 = vunpack.i.l.bf16 %v5445_v24 }
 0x426   : > { %5184 = vmatprep.subr.msk.bf16.mxu1 %vm6128_vm2, %v5182_v32  ;;  %5189 = vmatprep.subr.bf16.mxu0 %v5188_v29 }
 0x427   : > { %v6275_v43 = vpack.c.bf16 %v5447_v19, %v5446_v36 }
 0x428   : > { %v5440_v37 = vpop.permute.xlu0 %5439  ;;  %v5450_v42 = vpop.permute.xlu1 %5449 }
 0x429   : > { %v5442_v39 = vunpack.i.h.bf16 %v5440_v37  ;;  %v5441_v40 = vunpack.i.l.bf16 %v5440_v37  ;;  %v5452_v44 = vunpack.i.h.bf16 %v5450_v42  ;;  %v5451_v45 = vunpack.i.l.bf16 %v5450_v42 }
 0x42b   : > { %4960 = vmatmul.mubr.msk.f32.vlgmr.msra.gmra.mrb[10].mxu1 %vm411_vm1, %v1301_v59  ;;  %4967 = vmatmul.mubr.msk.f32.vlgmr.msra.gmra.mrb[16].mxu0 %vm411_vm1, %v1392_v35  ;;  %v5192_v41 = vpack.c.bf16 %v5442_v39, %v5441_v40  ;;  %v6279_v46 = vpack.c.bf16 %v5452_v44, %v5451_v45 }
 0x42c   : > { %5187 = vmatpush3.bf16.xpose.msk.msra.mxu1 %vm6128_vm2, %v5182_v32  ;;  %4973 = vmatprep.mubr.msk.f32.mxu1 %vm411_vm1, %v1481_v1 }
 0x42d   : > { %5191 = vmatpush3.bf16.msra.mxu0 %v5188_v29  ;;  %5193 = vmatprep.subr.bf16.mxu1 %v5192_v41 }
 0x42e   : > { %5197 = vmatprep.subr.bf16.mxu0 %v6275_v43 }
 0x433   : > { %4974 = vmatmul.mubr.msk.f32.vlgmr.msra.gmra.mrb[12].mxu1 %vm411_vm1, %v1483_v8 }
 0x434   : > { %5195 = vmatpush3.bf16.msra.mxu1 %v5192_v41 }
 0x435   : > { %5201 = vmatprep.subr.bf16.mxu1 %v6279_v46 }
 0x4b4   : > { %v4926_v47 = vpop.f32.mrb[10].mxu0 }
 0x4b5   : > { %1200 = vst.msk [vmem:[#allocation2 + $0x8] sm:$0xff] %vm411_vm1, %v4926_v47  ;;  %v929_v48 = vpop.f32.mrb[11].mxu0 }
 0x4b6   : > { %1199 = vst.msk [vmem:[#allocation2] sm:$0xff] %vm411_vm1, %v929_v48 }
 0x4bd   : > { %v4933_v49 = vpop.f32.mrb[6].mxu1 }
 0x4be   : > { %1202 = vst.msk [vmem:[#allocation2 + $0x18] sm:$0xff] %vm411_vm1, %v4933_v49  ;;  %v1016_v50 = vpop.f32.mrb[7].mxu1 }
 0x4bf   : > { %1201 = vst.msk [vmem:[#allocation2 + $0x10] sm:$0xff] %vm411_vm1, %v1016_v50 }
 0x4ee   : > { %v4940_v51 = vpop.f32.mrb[12].mxu0 }
 0x4ef   : > { %1204 = vst.msk [vmem:[#allocation2 + $0x28] sm:$0xff] %vm411_vm1, %v4940_v51  ;;  %v1103_v52 = vpop.f32.mrb[13].mxu0 }
 0x4f0   : > { %1203 = vst.msk [vmem:[#allocation2 + $0x20] sm:$0xff] %vm411_vm1, %v1103_v52 }
 0x4f6   : > { %v4954_v63 = vpop.f32.mrb[14].mxu0  ;;  %v4947_v54 = vpop.f32.mrb[8].mxu1 }
 0x4f7   : > { %v1295_v56 = vadd.f32 %v4954_v63, %v400_v53  ;;  %1206 = vst.msk [vmem:[#allocation2 + $0x38] sm:$0xff] %vm411_vm1, %v4947_v54  ;;  %v1289_v57 = vpop.f32.mrb[15].mxu0  ;;  %v1190_v58 = vpop.f32.mrb[9].mxu1 }
 0x4f8   : > { %1205 = vst.msk [vmem:[#allocation2 + $0x30] sm:$0xff] %vm411_vm1, %v1190_v58  ;;  %v1290_v59 = vadd.f32 %v1289_v57, %v399_v55 }
 0x4f9   : > { %v1574_v60 = vsel %vm762_vm3, %v1295_v56, -inf }
 0x4fa   : > { %1575 = vmax.xlane.f32.xlu0 %v1574_v60  ;;  %v1571_v61 = vsel %vm762_vm3, %v1290_v59, -inf }
 0x4fe   : > { %v4961_v62 = vpop.f32.mrb[10].mxu1  ;;  %v4968_v1 = vpop.f32.mrb[16].mxu0  ;;  %1572 = vmax.xlane.f32.xlu0 %v1571_v61 }
 0x4ff   : > { %v1386_v2 = vadd.f32 %v4961_v62, %v400_v53  ;;  %v1477_v3 = vadd.f32 %v4968_v1, %v400_v53  ;;  %v1380_v4 = vpop.f32.mrb[11].mxu1  ;;  %v1471_v5 = vpop.f32.mrb[17].mxu0 }
 0x500   : > { %v1381_v6 = vadd.f32 %v1380_v4, %v399_v55  ;;  %v1472_v9 = vadd.f32 %v1471_v5, %v399_v55 }
 0x501   : > { %v1586_v7 = vsel %vm762_vm3, %v1477_v3, -inf  ;;  %v1580_v8 = vsel %vm762_vm3, %v1386_v2, -inf }
 0x502   : > { %1587 = vmax.xlane.f32.xlu1 %v1586_v7  ;;  %1581 = vmax.xlane.f32.xlu0 %v1580_v8  ;;  %v1577_v10 = vsel %vm762_vm3, %v1381_v6, -inf  ;;  %v1583_v14 = vsel %vm762_vm3, %v1472_v9, -inf }
 0x506   : > { %v4975_v11 = vpop.f32.mrb[12].mxu1  ;;  %1578 = vmax.xlane.f32.xlu1 %v1577_v10 }
 0x507   : > { %v1568_v12 = vadd.f32 %v4975_v11, %v400_v53  ;;  %v1562_v13 = vpop.f32.mrb[13].mxu1 }
 0x508   : > { %v1563_v0 = vadd.f32 %v1562_v13, %v399_v55 }
 0x509   : > { %v1592_v15 = vsel %vm762_vm3, %v1568_v12, -inf }
 0x50a   : > { %1584 = vmax.xlane.f32.xlu1 %v1583_v14  ;;  %1593 = vmax.xlane.f32.xlu0 %v1592_v15  ;;  %v1589_v17 = vsel %vm762_vm3, %v1563_v0, -inf }
 0x50e   : > { %1590 = vmax.xlane.f32.xlu0 %v1589_v17 }
 0x51b   : > { %5459 = vrot.lane.b32.xlu1 %v6092_v25, %s5829_s7 }
 0x524   : > { %5454 = vrot.lane.b32.xlu0 %v6082_v20, %s5829_s7 }
 0x587   : > { %v1576_v22 = vpop.xlane.xlu0 %1575 }
 0x588   : > { %v1596_v27 = vsub.f32 %v1295_v56, %v1576_v22 }
 0x58a   : > { %v1605_v29 = vmul.f32 1.442695, %v1596_v27 }
 0x58b   : > { %v1573_v32 = vpop.xlane.xlu0 %1572 }
 0x58c   : > { %5565 = vpow2.f32 %v1605_v29  ;;  %v1595_v35 = vsub.f32 %v1290_v59, %v1573_v32 }
 0x58e   : > { %v1603_v24 = vmul.f32 1.442695, %v1595_v35 }
 0x58f   : > { %v1588_v19 = vpop.xlane.xlu1 %1587  ;;  %v1582_v36 = vpop.xlane.xlu0 %1581 }
 0x590   : > { %5567 = vpow2.f32 %v1603_v24  ;;  %v1600_v37 = vsub.f32 %v1477_v3, %v1588_v19  ;;  %v1598_v39 = vsub.f32 %v1386_v2, %v1582_v36 }
 0x592   : > { %v1613_v40 = vmul.f32 1.442695, %v1600_v37  ;;  %v1609_v41 = vmul.f32 1.442695, %v1598_v39 }
 0x593   : > { %v1579_v42 = vpop.xlane.xlu1 %1578 }
 0x594   : > { %5569 = vpow2.f32 %v1613_v40  ;;  %v1597_v44 = vsub.f32 %v1381_v6, %v1579_v42 }
 0x595   : > { %5571 = vpow2.f32 %v1609_v41 }
 0x596   : > { %v6302_v45 = vpop.eup %5565  ;;  %v1607_v47 = vmul.f32 1.442695, %v1597_v44 }
 0x597   : > { %v1622_v48 = vsel %vm762_vm3, %v6302_v45, 0.0  ;;  %v1585_v56 = vpop.xlane.xlu1 %1584  ;;  %v1594_v58 = vpop.xlane.xlu0 %1593 }
 0x598   : > { %5573 = vpow2.f32 %v1607_v47  ;;  %1623 = vadd.xlane.f32.xlu1 %v1622_v48  ;;  %v1599_v57 = vsub.f32 %v1472_v9, %v1585_v56  ;;  %v1602_v60 = vsub.f32 %v1568_v12, %v1594_v58 }
 0x59a   : > { %v6306_v49 = vpop.eup %5567  ;;  %v1611_v59 = vmul.f32 1.442695, %v1599_v57  ;;  %v1617_v62 = vmul.f32 1.442695, %v1602_v60 }
 0x59b   : > { %v1619_v50 = vsel %vm762_vm3, %v6306_v49, 0.0  ;;  %v1591_v61 = vpop.xlane.xlu0 %1590  ;;  %v5460_v9 = vpop.permute.xlu1 %5459 }
 0x59c   : > { %1620 = vadd.xlane.f32.xlu1 %v1619_v50  ;;  %5575 = vpow2.f32 %v1611_v59  ;;  %v1601_v1 = vsub.f32 %v1563_v0, %v1591_v61  ;;  %v5462_v19 = vunpack.i.h.bf16 %v5460_v9  ;;  %v5461_v36 = vunpack.i.l.bf16 %v5460_v9 }
 0x59d   : > { %5577 = vpow2.f32 %v1617_v62 }
 0x59e   : > { %v6310_v51 = vpop.eup %5569  ;;  %v1615_v2 = vmul.f32 1.442695, %v1601_v1  ;;  %v5210_v40 = vpack.c.bf16 %v5462_v19, %v5461_v36 }
 0x59f   : > { %v6312_v52 = vpop.eup %5571  ;;  %v1634_v53 = vsel %vm762_vm3, %v6310_v51, 0.0  ;;  %v5455_v12 = vpop.permute.xlu0 %5454 }
 0x5a0   : > { %1635 = vadd.xlane.f32.xlu1 %v1634_v53  ;;  %v1628_v63 = vsel %vm762_vm3, %v6312_v52, 0.0  ;;  %5579 = vpow2.f32 %v1615_v2  ;;  %v5457_v17 = vunpack.i.h.bf16 %v5455_v12  ;;  %v5456_v22 = vunpack.i.l.bf16 %v5455_v12 }
 0x5a1   : > { %1629 = vadd.xlane.f32.xlu0 %v1628_v63 }
 0x5a2   : > { %v6318_v54 = vpop.eup %5573  ;;  %v5204_v32 = vpack.c.bf16 %v5457_v17, %v5456_v22 }
 0x5a3   : > { %v1625_v55 = vsel %vm762_vm3, %v6318_v54, 0.0 }
 0x5a5   : > { %1626 = vadd.xlane.f32.xlu0 %v1625_v55 }
 0x5a6   : > { %v6326_v3 = vpop.eup %5575 }
 0x5a7   : > { %v1631_v4 = vsel %vm762_vm3, %v6326_v3, 0.0  ;;  %v6330_v5 = vpop.eup %5577 }
 0x5a8   : > { %v1640_v6 = vsel %vm762_vm3, %v6330_v5, 0.0 }
 0x5aa   : > { %v6334_v7 = vpop.eup %5579 }
 0x5ab   : > { %v1637_v8 = vsel %vm762_vm3, %v6334_v7, 0.0 }
 0x5b1   : > { %2139 = vrot.lane.b32.xlu1 %v6086_v23, %s5830_s27 }
 0x5bb   : > { %2048 = vrot.lane.b32.xlu0 %v6076_v18, %s5830_s27 }
 0x5d5   : > { %1632 = vadd.xlane.f32.xlu1 %v1631_v4 }
 0x5da   : > { %1641 = vadd.xlane.f32.xlu0 %v1640_v6 }
 0x5de   : > { %1638 = vadd.xlane.f32.xlu0 %v1637_v8 }
 0x5e6   : > { %5469 = vrot.lane.b32.xlu1 %v6116_v34, %s5829_s7 }
 0x5ea   : > { %2141 = vrot.lane.b32.xlu1 %v6084_v21, %s5830_s27 }
 0x5ee   : > { %2321 = vrot.lane.b32.xlu1 %v6108_v33, %s5830_s27 }
 0x5f2   : > { %2323 = vrot.lane.b32.xlu1 %v6106_v31, %s5830_s27 }
 0x5f4   : > { %5464 = vrot.lane.b32.xlu0 %v6104_v30, %s5829_s7 }
 0x5f6   : > { %5474 = vrot.lane.b32.xlu1 %v6082_v20, %s5831_s20 }
 0x5f8   : > { %2050 = vrot.lane.b32.xlu0 %v6074_v16, %s5830_s27 }
 0x5fa   : > { %5484 = vrot.lane.b32.xlu1 %v6104_v30, %s5831_s20 }
 0x5fc   : > { %2230 = vrot.lane.b32.xlu0 %v6096_v28, %s5830_s27 }
 0x5fe   : > { %5489 = vrot.lane.b32.xlu1 %v6116_v34, %s5831_s20 }
 0x600   : > { %2232 = vrot.lane.b32.xlu0 %v6094_v26, %s5830_s27  ;;  %s6981_s27 = scalar_lea.hbm %s7037_s4, %s4731_s30 }
 0x604   : > { %5479 = vrot.lane.b32.xlu0 %v6092_v25, %s5831_s20  ;;  %s4497_s20 = scalar_lea.sflag [#allocation5], %s6051_s8 }
 0x625   : > { %v1624_v10 = vpop.xlane.xlu1 %1623 }
 0x626   : > { %5581 = vrcp.f32 %v1624_v10 }
 0x629   : > { %v1621_v11 = vpop.xlane.xlu1 %1620 }
 0x62a   : > { %5583 = vrcp.f32 %v1621_v11 }
 0x62e   : > { %v1630_v13 = vpop.xlane.xlu0 %1629 }
 0x62f   : > { %5585 = vrcp.f32 %v1630_v13 }
 0x630   : > { %v5582_v14 = vpop.eup %5581 }
 0x631   : > { %v1652_v29 = vmul.f32 %v5582_v14, %v6302_v45 }
 0x632   : > { %v1627_v0 = vpop.xlane.xlu0 %1626 }
 0x633   : > { %5587 = vrcp.f32 %v1627_v0 }
 0x634   : > { %v5584_v15 = vpop.eup %5583 }
 0x635   : > { %v1651_v27 = vmul.f32 %v5584_v15, %v6306_v49 }
 0x636   : > { %v2049_v44 = vpop.permute.xlu0 %2048 }
 0x637   : > { %4980 = vmatprep.mubr.msk.f32.mxu0 %vm762_vm3, %v1651_v27 }
 0x638   : > { %4981 = vmatmul.mubr.msk.f32.vlgmr.msra.gmra.mrb[18].mxu0 %vm762_vm3, %v1652_v29 }
 0x639   : > { %5199 = vmatpush3.bf16.msra.mxu0 %v6275_v43  ;;  %v5586_v35 = vpop.eup %5585  ;;  %v1636_v43 = vpop.xlane.xlu1 %1635 }
 0x63a   : > { %5206 = vmatprep.subr.msk.bf16.mxu0 %vm6128_vm2, %v5204_v32  ;;  %v1654_v39 = vmul.f32 %v5586_v35, %v6312_v52  ;;  %5589 = vrcp.f32 %v1636_v43 }
 0x63d   : > { %v5588_v24 = vpop.eup %5587  ;;  %v2140_v41 = vpop.permute.xlu1 %2139 }
 0x63e   : > { %v1653_v37 = vmul.f32 %v5588_v24, %v6318_v54 }
 0x640   : > { %4987 = vmatprep.mubr.msk.f32.mxu1 %vm762_vm3, %v1653_v37 }
 0x641   : > { %4988 = vmatmul.mubr.msk.f32.vlgmr.msra.gmra.mrb[14].mxu1 %vm762_vm3, %v1654_v39 }
 0x642   : > { %5203 = vmatpush3.bf16.msra.mxu1 %v6279_v46 }
 0x643   : > { %5212 = vmatprep.subr.msk.bf16.mxu1 %vm6128_vm2, %v5210_v40 }
 0x644   : > { %v5590_v50 = vpop.eup %5589 }
 0x645   : > { %v1656_v54 = vmul.f32 %v5590_v50, %v6310_v51 }
 0x662   : > { %v1633_v42 = vpop.xlane.xlu1 %1632 }
 0x663   : > { %5591 = vrcp.f32 %v1633_v42 }
 0x666   : > { %v5470_v45 = vpop.permute.xlu1 %5469 }
 0x667   : > { %v1642_v47 = vpop.xlane.xlu0 %1641  ;;  %v5472_v51 = vunpack.i.h.bf16 %v5470_v45  ;;  %v5471_v62 = vunpack.i.l.bf16 %v5470_v45 }
 0x668   : > { %5593 = vrcp.f32 %v1642_v47 }
 0x669   : > { %v5222_v10 = vpack.c.bf16 %v5472_v51, %v5471_v62 }
 0x66a   : > { %v2142_v48 = vpop.permute.xlu1 %2141 }
 0x66b   : > { %v1639_v49 = vpop.xlane.xlu0 %1638 }
 0x66c   : > { %5595 = vrcp.f32 %v1639_v49 }
 0x66d   : > { %v5592_v52 = vpop.eup %5591 }
 0x66e   : > { %v2322_v53 = vpop.permute.xlu1 %2321  ;;  %v1655_v46 = vmul.f32 %v5592_v52, %v6326_v3 }
 0x66f   : > { %v5465_v63 = vpop.permute.xlu0 %5464 }
 0x670   : > { %v5467_v55 = vunpack.i.h.bf16 %v5465_v63  ;;  %v5466_v56 = vunpack.i.l.bf16 %v5465_v63  ;;  %4994 = vmatprep.mubr.msk.f32.mxu0 %vm762_vm3, %v1655_v46 }
 0x671   : > { %4995 = vmatmul.mubr.msk.f32.vlgmr.msra.gmra.mrb[20].mxu0 %vm762_vm3, %v1656_v54 }
 0x672   : > { %v5216_v57 = vpack.c.bf16 %v5467_v55, %v5466_v56  ;;  %5209 = vmatpush3.bf16.xpose.msk.msra.mxu0 %vm6128_vm2, %v5204_v32  ;;  %v2324_v58 = vpop.permute.xlu1 %2323  ;;  %5008 = vmatprep.mubr.msk.f32.mxu0 %vm411_vm1, %v2049_v44  ;;  %v5594_v60 = vpop.eup %5593 }
 0x673   : > { %v2051_v59 = vpop.permute.xlu0 %2050  ;;  %v1658_v8 = vmul.f32 %v5594_v60, %v6330_v5 }
 0x674   : > { %5218 = vmatprep.subr.msk.bf16.mxu0 %vm6128_vm2, %v5216_v57 }
 0x676   : > { %v5596_v61 = vpop.eup %5595  ;;  %v5475_v1 = vpop.permute.xlu1 %5474 }
 0x677   : > { %v5477_v2 = vunpack.i.h.bf16 %v5475_v1  ;;  %v5476_v3 = vunpack.i.l.bf16 %v5475_v1  ;;  %v2231_v4 = vpop.permute.xlu0 %2230  ;;  %v1657_v6 = vmul.f32 %v5596_v61, %v6334_v7 }
 0x679   : > { %5001 = vmatprep.mubr.msk.f32.mxu1 %vm762_vm3, %v1657_v6  ;;  %5009 = vmatmul.mubr.msk.f32.vlgmr.msra.gmra.mrb[22].mxu0 %vm411_vm1, %v2051_v59  ;;  %v5228_v9 = vpack.c.bf16 %v5477_v2, %v5476_v3 }
 0x67a   : > { %5002 = vmatmul.mubr.msk.f32.vlgmr.msra.gmra.mrb[16].mxu1 %vm762_vm3, %v1658_v8  ;;  %5221 = vmatpush3.bf16.xpose.msk.msra.mxu0 %vm6128_vm2, %v5216_v57  ;;  %v5485_v11 = vpop.permute.xlu1 %5484 }
 0x67b   : > { %5215 = vmatpush3.bf16.xpose.msk.msra.mxu1 %vm6128_vm2, %v5210_v40  ;;  %5022 = vmatprep.mubr.msk.f32.mxu0 %vm411_vm1, %v2231_v4  ;;  %v2233_v7 = vpop.permute.xlu0 %2232  ;;  %v5487_v5 = vunpack.i.h.bf16 %v5485_v11  ;;  %v5486_v12 = vunpack.i.l.bf16 %v5485_v11  ;;  %v402_v40 = vld [vmem:[#allocation8 + $0x28] sm:$0xff] }
 0x67c   : > { %5015 = vmatprep.mubr.msk.f32.mxu1 %vm411_vm1, %v2140_v41  ;;  %5224 = vmatprep.subr.msk.bf16.mxu1 %vm6128_vm2, %v5222_v10  ;;  %v401_v41 = vld [vmem:[#allocation8 + $0x20] sm:$0xff] }
 0x67d   : > { %5229 = vmatprep.subr.bf16.mxu0 %v5228_v9  ;;  %v6396_v15 = vpack.c.bf16 %v5487_v5, %v5486_v12 }
 0x67e   : > { %v5490_v22 = vpop.permute.xlu1 %5489 }
 0x67f   : > { %v5480_v13 = vpop.permute.xlu0 %5479  ;;  %v5492_v27 = vunpack.i.h.bf16 %v5490_v22  ;;  %v5491_v29 = vunpack.i.l.bf16 %v5490_v22 }
 0x680   : > { %v5482_v0 = vunpack.i.h.bf16 %v5480_v13  ;;  %v5481_v14 = vunpack.i.l.bf16 %v5480_v13 }
 0x681   : > { %5023 = vmatmul.mubr.msk.f32.vlgmr.msra.gmra.mrb[24].mxu0 %vm411_vm1, %v2233_v7  ;;  %v6403_v32 = vpack.c.bf16 %v5492_v27, %v5491_v29 }
 0x682   : > { %5016 = vmatmul.mubr.msk.f32.vlgmr.msra.gmra.mrb[18].mxu1 %vm411_vm1, %v2142_v48  ;;  %5231 = vmatpush3.bf16.msra.mxu0 %v5228_v9  ;;  %v5232_v17 = vpack.c.bf16 %v5482_v0, %v5481_v14 }
 0x683   : > { %5227 = vmatpush3.bf16.xpose.msk.msra.mxu1 %vm6128_vm2, %v5222_v10  ;;  %5029 = vmatprep.mubr.msk.f32.mxu1 %vm411_vm1, %v2322_v53 }
 0x684   : > { %5237 = vmatprep.subr.bf16.mxu0 %v6396_v15  ;;  %5233 = vmatprep.subr.bf16.mxu1 %v5232_v17 }
 0x68a   : > { %5030 = vmatmul.mubr.msk.f32.vlgmr.msra.gmra.mrb[20].mxu1 %vm411_vm1, %v2324_v58 }
 0x68b   : > { %5235 = vmatpush3.bf16.msra.mxu1 %v5232_v17 }
 0x68c   : > { %5241 = vmatprep.subr.bf16.mxu1 %v6403_v32 }
 0x70b   : > { %v6406_v35 = vpop.f32.mrb[18].mxu0 }
 0x70c   : > { %v6408_v24 = vpop.f32.mrb[19].mxu0 }
 0x714   : > { %v6410_v19 = vpop.f32.mrb[14].mxu1 }
 0x715   : > { %v6412_v36 = vpop.f32.mrb[15].mxu1 }
 0x744   : > { %v6414_v37 = vpop.f32.mrb[20].mxu0 }
 0x745   : > { %v6416_v39 = vpop.f32.mrb[21].mxu0 }
 0x74c   : > { %v5010_v43 = vpop.f32.mrb[22].mxu0 }
 0x74d   : > { %v2136_v42 = vadd.f32 %v5010_v43, %v402_v40  ;;  %v6418_v44 = vpop.f32.mrb[16].mxu1  ;;  %v2130_v45 = vpop.f32.mrb[23].mxu0 }
 0x74e   : > { %v6420_v47 = vpop.f32.mrb[17].mxu1  ;;  %v2131_v48 = vadd.f32 %v2130_v45, %v401_v41 }
 0x74f   : > { %v2415_v49 = vsel %vm762_vm3, %v2136_v42, -inf }
 0x750   : > { %2416 = vmax.xlane.f32.xlu0 %v2415_v49  ;;  %v2412_v50 = vsel %vm762_vm3, %v2131_v48, -inf }
 0x754   : > { %v5024_v52 = vpop.f32.mrb[24].mxu0  ;;  %2413 = vmax.xlane.f32.xlu0 %v2412_v50 }
 0x755   : > { %v5017_v53 = vpop.f32.mrb[18].mxu1  ;;  %v2318_v46 = vadd.f32 %v5024_v52, %v402_v40  ;;  %v2312_v63 = vpop.f32.mrb[25].mxu0 }
 0x756   : > { %v2227_v54 = vadd.f32 %v5017_v53, %v402_v40  ;;  %v2221_v55 = vpop.f32.mrb[19].mxu1  ;;  %v2313_v59 = vadd.f32 %v2312_v63, %v401_v41 }
 0x757   : > { %v2222_v56 = vadd.f32 %v2221_v55, %v401_v41  ;;  %v2427_v57 = vsel %vm762_vm3, %v2318_v46, -inf }
 0x758   : > { %2428 = vmax.xlane.f32.xlu1 %v2427_v57  ;;  %v2421_v58 = vsel %vm762_vm3, %v2227_v54, -inf  ;;  %v2424_v1 = vsel %vm762_vm3, %v2313_v59, -inf }
 0x759   : > { %2422 = vmax.xlane.f32.xlu0 %v2421_v58  ;;  %v2418_v60 = vsel %vm762_vm3, %v2222_v56, -inf }
 0x75c   : > { %2419 = vmax.xlane.f32.xlu1 %v2418_v60 }
 0x75d   : > { %v5031_v61 = vpop.f32.mrb[20].mxu1 }
 0x75e   : > { %v2409_v51 = vadd.f32 %v5031_v61, %v402_v40  ;;  %v2403_v62 = vpop.f32.mrb[21].mxu1 }
 0x75f   : > { %v2404_v2 = vadd.f32 %v2403_v62, %v401_v41 }
 0x760   : > { %2425 = vmax.xlane.f32.xlu1 %v2424_v1  ;;  %v2433_v3 = vsel %vm762_vm3, %v2409_v51, -inf }
 0x761   : > { %2434 = vmax.xlane.f32.xlu0 %v2433_v3  ;;  %v2430_v4 = vsel %vm762_vm3, %v2404_v2, -inf }
 0x765   : > { %2431 = vmax.xlane.f32.xlu0 %v2430_v4 }
 0x771   : > { %5499 = vrot.lane.b32.xlu1 %v6092_v25, %s5832_s29 }
 0x77b   : > { %5494 = vrot.lane.b32.xlu0 %v6082_v20, %s5832_s29 }
 0x7dd   : > { %v2417_v6 = vpop.xlane.xlu0 %2416 }
 0x7de   : > { %v2437_v8 = vsub.f32 %v2136_v42, %v2417_v6 }
 0x7e0   : > { %v2446_v9 = vmul.f32 1.442695, %v2437_v8 }
 0x7e1   : > { %v2414_v10 = vpop.xlane.xlu0 %2413 }
 0x7e2   : > { %5597 = vpow2.f32 %v2446_v9  ;;  %v2436_v11 = vsub.f32 %v2131_v48, %v2414_v10 }
 0x7e4   : > { %v2444_v7 = vmul.f32 1.442695, %v2436_v11 }
 0x7e5   : > { %v2429_v5 = vpop.xlane.xlu1 %2428 }
 0x7e6   : > { %5599 = vpow2.f32 %v2444_v7  ;;  %v2441_v12 = vsub.f32 %v2318_v46, %v2429_v5  ;;  %v2423_v13 = vpop.xlane.xlu0 %2422 }
 0x7e7   : > { %v2439_v0 = vsub.f32 %v2227_v54, %v2423_v13 }
 0x7e8   : > { %v2454_v14 = vmul.f32 1.442695, %v2441_v12 }
 0x7e9   : > { %v2450_v17 = vmul.f32 1.442695, %v2439_v0  ;;  %v2420_v22 = vpop.xlane.xlu1 %2419 }
 0x7ea   : > { %5601 = vpow2.f32 %v2454_v14  ;;  %v2438_v27 = vsub.f32 %v2222_v56, %v2420_v22 }
 0x7eb   : > { %5603 = vpow2.f32 %v2450_v17 }
 0x7ec   : > { %v6434_v29 = vpop.eup %5597  ;;  %v2448_v40 = vmul.f32 1.442695, %v2438_v27 }
 0x7ed   : > { %v2463_v43 = vsel %vm762_vm3, %v6434_v29, 0.0  ;;  %v2426_v46 = vpop.xlane.xlu1 %2425 }
 0x7ee   : > { %5605 = vpow2.f32 %v2448_v40  ;;  %2464 = vadd.xlane.f32.xlu1 %v2463_v43  ;;  %v2440_v63 = vsub.f32 %v2313_v59, %v2426_v46  ;;  %v2435_v54 = vpop.xlane.xlu0 %2434 }
 0x7ef   : > { %v2443_v56 = vsub.f32 %v2409_v51, %v2435_v54 }
 0x7f0   : > { %v5600_v41 = vpop.eup %5599  ;;  %v2452_v55 = vmul.f32 1.442695, %v2440_v63 }
 0x7f1   : > { %v2460_v42 = vsel %vm762_vm3, %v5600_v41, 0.0  ;;  %v2458_v58 = vmul.f32 1.442695, %v2443_v56 }
 0x7f2   : > { %2461 = vadd.xlane.f32.xlu1 %v2460_v42  ;;  %v2432_v57 = vpop.xlane.xlu0 %2431  ;;  %5607 = vpow2.f32 %v2452_v55 }
 0x7f3   : > { %v2442_v60 = vsub.f32 %v2404_v2, %v2432_v57  ;;  %5609 = vpow2.f32 %v2458_v58  ;;  %v5500_v2 = vpop.permute.xlu1 %5499 }
 0x7f4   : > { %v6439_v45 = vpop.eup %5601  ;;  %v5502_v5 = vunpack.i.h.bf16 %v5500_v2  ;;  %v5501_v12 = vunpack.i.l.bf16 %v5500_v2 }
 0x7f5   : > { %v6441_v48 = vpop.eup %5603  ;;  %v2475_v49 = vsel %vm762_vm3, %v6439_v45, 0.0  ;;  %v2456_v61 = vmul.f32 1.442695, %v2442_v60 }
 0x7f6   : > { %2476 = vadd.xlane.f32.xlu1 %v2475_v49  ;;  %v2469_v50 = vsel %vm762_vm3, %v6441_v48, 0.0  ;;  %v5495_v9 = vpop.permute.xlu0 %5494  ;;  %v5250_v14 = vpack.c.bf16 %v5502_v5, %v5501_v12 }
 0x7f7   : > { %2470 = vadd.xlane.f32.xlu0 %v2469_v50  ;;  %5611 = vpow2.f32 %v2456_v61  ;;  %v5497_v10 = vunpack.i.h.bf16 %v5495_v9 }
 0x7f8   : > { %v5606_v52 = vpop.eup %5605 }
 0x7f9   : > { %v2466_v53 = vsel %vm762_vm3, %v5606_v52, 0.0 }
 0x7fb   : > { %2467 = vadd.xlane.f32.xlu0 %v2466_v53 }
 0x7fc   : > { %v6452_v62 = vpop.eup %5607 }
 0x7fd   : > { %v2472_v1 = vsel %vm762_vm3, %v6452_v62, 0.0  ;;  %v6456_v3 = vpop.eup %5609 }
 0x7fe   : > { %v2481_v59 = vsel %vm762_vm3, %v6456_v3, 0.0 }
 0x801   : > { %v6460_v4 = vpop.eup %5611 }
 0x802   : > { %v2478_v51 = vsel %vm762_vm3, %v6460_v4, 0.0 }
 0x807   : > { %5509 = vrot.lane.b32.xlu1 %v6116_v34, %s5832_s29 }
 0x811   : > { %5504 = vrot.lane.b32.xlu0 %v6104_v30, %s5832_s29 }
 0x82b   : > { %2473 = vadd.xlane.f32.xlu1 %v2472_v1 }
 0x830   : > { %2482 = vadd.xlane.f32.xlu0 %v2481_v59 }
 0x834   : > { %2479 = vadd.xlane.f32.xlu0 %v2478_v51 }
 0x83c   : > { %2980 = vrot.lane.b32.xlu1 %v6086_v23, %s5833_s5 }
 0x840   : > { %2982 = vrot.lane.b32.xlu1 %v6084_v21, %s5833_s5 }
 0x844   : > { %3162 = vrot.lane.b32.xlu1 %v6108_v33, %s5833_s5 }
 0x848   : > { %3164 = vrot.lane.b32.xlu1 %v6106_v31, %s5833_s5 }
 0x84a   : > { %2889 = vrot.lane.b32.xlu0 %v6076_v18, %s5833_s5  ;;  %v5496_v18 = vunpack.i.l.bf16 %v5495_v9  ;;  %v404_v9 = vld [vmem:[#allocation8 + $0x38] sm:$0xff] }
 0x84e   : > { %2891 = vrot.lane.b32.xlu0 %v6074_v16, %s5833_s5 }
 0x852   : > { %3071 = vrot.lane.b32.xlu0 %v6096_v28, %s5833_s5 }
 0x856   : > { %3073 = vrot.lane.b32.xlu0 %v6094_v26, %s5833_s5  ;;  %v5244_v26 = vpack.c.bf16 %v5497_v10, %v5496_v18  ;;  %s5751_s5 = sshll.u32 %s5843_s19, 4  ;;  %s5752_s5 = int_to_ptr.vmem [resolvable:$false] %s5751_s5 }
 0x87b   : > { %v2465_v6 = vpop.xlane.xlu1 %2464 }
 0x87c   : > { %5613 = vrcp.f32 %v2465_v6 }
 0x87f   : > { %v2462_v8 = vpop.xlane.xlu1 %2461 }
 0x880   : > { %5615 = vrcp.f32 %v2462_v8 }
 0x884   : > { %v2471_v23 = vpop.xlane.xlu0 %2470 }
 0x885   : > { %5617 = vrcp.f32 %v2471_v23  ;;  %v403_v23 = vld [vmem:[#allocation8 + $0x30] sm:$0xff] }
 0x886   : > { %v5614_v33 = vpop.eup %5613 }
 0x887   : > { %v2493_v16 = vmul.f32 %v5614_v33, %v6434_v29 }
 0x888   : > { %v2468_v21 = vpop.xlane.xlu0 %2467 }
 0x889   : > { %5619 = vrcp.f32 %v2468_v21 }
 0x88a   : > { %v5616_v31 = vpop.eup %5615 }
 0x88b   : > { %v2492_v11 = vmul.f32 %v5616_v31, %v5600_v41 }
 0x88c   : > { %v5505_v27 = vpop.permute.xlu0 %5504 }
 0x88d   : > { %5036 = vmatprep.mubr.msk.f32.mxu0 %vm762_vm3, %v2492_v11  ;;  %v5507_v42 = vunpack.i.h.bf16 %v5505_v27 }
 0x88e   : > { %5037 = vmatmul.mubr.msk.f32.vlgmr.msra.gmra.mrb[26].mxu0 %vm762_vm3, %v2493_v16 }
 0x88f   : > { %5239 = vmatpush3.bf16.msra.mxu0 %v6396_v15  ;;  %v5618_v28 = vpop.eup %5617  ;;  %v2477_v15 = vpop.xlane.xlu1 %2476 }
 0x890   : > { %5246 = vmatprep.subr.msk.bf16.mxu0 %vm6128_vm2, %v5244_v26  ;;  %v2495_v0 = vmul.f32 %v5618_v28, %v6441_v48  ;;  %5621 = vrcp.f32 %v2477_v15  ;;  %v5506_v48 = vunpack.i.l.bf16 %v5505_v27 }
 0x893   : > { %v5620_v7 = vpop.eup %5619  ;;  %v5510_v17 = vpop.permute.xlu1 %5509 }
 0x894   : > { %v2494_v13 = vmul.f32 %v5620_v7, %v5606_v52  ;;  %v5256_v52 = vpack.c.bf16 %v5507_v42, %v5506_v48  ;;  %v5512_v54 = vunpack.i.h.bf16 %v5510_v17  ;;  %v5511_v55 = vunpack.i.l.bf16 %v5510_v17 }
 0x896   : > { %5043 = vmatprep.mubr.msk.f32.mxu1 %vm762_vm3, %v2494_v13  ;;  %v5262_v58 = vpack.c.bf16 %v5512_v54, %v5511_v55 }
 0x897   : > { %5044 = vmatmul.mubr.msk.f32.vlgmr.msra.gmra.mrb[22].mxu1 %vm762_vm3, %v2495_v0 }
 0x898   : > { %5243 = vmatpush3.bf16.msra.mxu1 %v6403_v32 }
 0x899   : > { %5252 = vmatprep.subr.msk.bf16.mxu1 %vm6128_vm2, %v5250_v14 }
 0x89a   : > { %v5622_v43 = vpop.eup %5621 }
 0x89b   : > { %v2497_v50 = vmul.f32 %v5622_v43, %v6439_v45 }
 0x8b8   : > { %v2474_v22 = vpop.xlane.xlu1 %2473 }
 0x8b9   : > { %5623 = vrcp.f32 %v2474_v22 }
 0x8bc   : > { %v2981_v56 = vpop.permute.xlu1 %2980 }
 0x8bd   : > { %v2483_v29 = vpop.xlane.xlu0 %2482 }
 0x8be   : > { %5625 = vrcp.f32 %v2483_v29 }
 0x8c0   : > { %v2983_v61 = vpop.permute.xlu1 %2982 }
 0x8c1   : > { %v2480_v40 = vpop.xlane.xlu0 %2479 }
 0x8c2   : > { %5627 = vrcp.f32 %v2480_v40 }
 0x8c3   : > { %v5624_v41 = vpop.eup %5623 }
 0x8c4   : > { %v2496_v49 = vmul.f32 %v5624_v41, %v6452_v62  ;;  %v3163_v1 = vpop.permute.xlu1 %3162 }
 0x8c5   : > { %v2890_v32 = vpop.permute.xlu0 %2889 }
 0x8c6   : > { %5050 = vmatprep.mubr.msk.f32.mxu0 %vm762_vm3, %v2496_v49 }
 0x8c7   : > { %5051 = vmatmul.mubr.msk.f32.vlgmr.msra.gmra.mrb[28].mxu0 %vm762_vm3, %v2497_v50 }
 0x8c8   : > { %5249 = vmatpush3.bf16.xpose.msk.msra.mxu0 %vm6128_vm2, %v5244_v26  ;;  %5064 = vmatprep.mubr.msk.f32.mxu0 %vm411_vm1, %v2890_v32  ;;  %v5626_v46 = vpop.eup %5625 }
 0x8c9   : > { %5258 = vmatprep.subr.msk.bf16.mxu0 %vm6128_vm2, %v5256_v52  ;;  %v2892_v53 = vpop.permute.xlu0 %2891  ;;  %v2499_v57 = vmul.f32 %v5626_v46, %v6456_v3  ;;  %v3165_v3 = vpop.permute.xlu1 %3164 }
 0x8cc   : > { %v5628_v63 = vpop.eup %5627 }
 0x8cd   : > { %v2498_v45 = vmul.f32 %v5628_v63, %v6460_v4  ;;  %v3072_v60 = vpop.permute.xlu0 %3071 }
 0x8cf   : > { %5057 = vmatprep.mubr.msk.f32.mxu1 %vm762_vm3, %v2498_v45  ;;  %5065 = vmatmul.mubr.msk.f32.vlgmr.msra.gmra.mrb[30].mxu0 %vm411_vm1, %v2892_v53 }
 0x8d0   : > { %5058 = vmatmul.mubr.msk.f32.vlgmr.msra.gmra.mrb[24].mxu1 %vm762_vm3, %v2499_v57  ;;  %5261 = vmatpush3.bf16.xpose.msk.msra.mxu0 %vm6128_vm2, %v5256_v52 }
 0x8d1   : > { %5255 = vmatpush3.bf16.xpose.msk.msra.mxu1 %vm6128_vm2, %v5250_v14  ;;  %5078 = vmatprep.mubr.msk.f32.mxu0 %vm411_vm1, %v3072_v60  ;;  %v3074_v62 = vpop.permute.xlu0 %3073 }
 0x8d2   : > { %5071 = vmatprep.mubr.msk.f32.mxu1 %vm411_vm1, %v2981_v56  ;;  %5264 = vmatprep.subr.msk.bf16.mxu1 %vm6128_vm2, %v5262_v58 }
 0x8d7   : > { %5079 = vmatmul.mubr.msk.f32.vlgmr.msra.gmra.mrb[32].mxu0 %vm411_vm1, %v3074_v62 }
 0x8d8   : > { %5072 = vmatmul.mubr.msk.f32.vlgmr.msra.gmra.mrb[26].mxu1 %vm411_vm1, %v2983_v61 }
 0x8d9   : > { %5267 = vmatpush3.bf16.xpose.msk.msra.mxu1 %vm6128_vm2, %v5262_v58  ;;  %5085 = vmatprep.mubr.msk.f32.mxu1 %vm411_vm1, %v3163_v1 }
 0x8e0   : > { %5086 = vmatmul.mubr.msk.f32.vlgmr.msra.gmra.mrb[28].mxu1 %vm411_vm1, %v3165_v3 }
 0x961   : > { %v6512_v59 = vpop.f32.mrb[26].mxu0 }
 0x962   : > { %v6514_v4 = vpop.f32.mrb[27].mxu0 }
 0x96a   : > { %v6516_v51 = vpop.f32.mrb[22].mxu1 }
 0x96b   : > { %v6518_v2 = vpop.f32.mrb[23].mxu1 }
 0x99a   : > { %v6520_v6 = vpop.f32.mrb[28].mxu0 }
 0x99b   : > { %v6522_v8 = vpop.f32.mrb[29].mxu0 }
 0x9a2   : > { %v5066_v38 = vpop.f32.mrb[30].mxu0 }
 0x9a3   : > { %v2977_v21 = vadd.f32 %v5066_v38, %v404_v9  ;;  %v6524_v33 = vpop.f32.mrb[24].mxu1  ;;  %v2971_v31 = vpop.f32.mrb[31].mxu0 }
 0x9a4   : > { %v6526_v10 = vpop.f32.mrb[25].mxu1  ;;  %v2972_v18 = vadd.f32 %v2971_v31, %v403_v23 }
 0x9a5   : > { %v3256_v11 = vsel %vm762_vm3, %v2977_v21, -inf }
 0x9a6   : > { %3257 = vmax.xlane.f32.xlu0 %v3256_v11  ;;  %v3253_v16 = vsel %vm762_vm3, %v2972_v18, -inf }
 0x9aa   : > { %v5080_v26 = vpop.f32.mrb[32].mxu0  ;;  %3254 = vmax.xlane.f32.xlu0 %v3253_v16 }
 0x9ab   : > { %v5073_v28 = vpop.f32.mrb[26].mxu1  ;;  %v3153_v7 = vpop.f32.mrb[33].mxu0  ;;  %v3159_v17 = vadd.f32 %v5080_v26, %v404_v9 }
 0x9ac   : > { %v3068_v5 = vadd.f32 %v5073_v28, %v404_v9  ;;  %v3062_v12 = vpop.f32.mrb[27].mxu1  ;;  %v3154_v14 = vadd.f32 %v3153_v7, %v403_v23 }
 0x9ad   : > { %v3063_v13 = vadd.f32 %v3062_v12, %v403_v23  ;;  %v3268_v41 = vsel %vm762_vm3, %v3159_v17, -inf }
 0x9ae   : > { %v3262_v0 = vsel %vm762_vm3, %v3068_v5, -inf  ;;  %v3265_v27 = vsel %vm762_vm3, %v3154_v14, -inf }
 0x9af   : > { %3263 = vmax.xlane.f32.xlu0 %v3262_v0  ;;  %v3259_v15 = vsel %vm762_vm3, %v3063_v13, -inf }
 0x9b0   : > { %3260 = vmax.xlane.f32.xlu1 %v3259_v15 }
 0x9b3   : > { %v5087_v22 = vpop.f32.mrb[28].mxu1 }
 0x9b4   : > { %v3244_v29 = vpop.f32.mrb[29].mxu1  ;;  %3266 = vmax.xlane.f32.xlu1 %v3265_v27  ;;  %v3250_v43 = vadd.f32 %v5087_v22, %v404_v9 }
 0x9b5   : > { %v3245_v40 = vadd.f32 %v3244_v29, %v403_v23 }
 0x9b6   : > { %v3274_v48 = vsel %vm762_vm3, %v3250_v43, -inf }
 0x9b7   : > { %v3271_v42 = vsel %vm762_vm3, %v3245_v40, -inf }
 0x9b8   : > { %3269 = vmax.xlane.f32.xlu1 %v3268_v41  ;;  %3272 = vmax.xlane.f32.xlu0 %v3271_v42 }
 0x9bc   : > { %3275 = vmax.xlane.f32.xlu0 %v3274_v48 }
 0x9c9   : > { %5514 = vrot.lane.b32.xlu1 %v6082_v20, %s5834_s9 }
 0xa33   : > { %v3258_v49 = vpop.xlane.xlu0 %3257 }
 0xa34   : > { %v3278_v32 = vsub.f32 %v2977_v21, %v3258_v49 }
 0xa36   : > { %v3287_v50 = vmul.f32 1.442695, %v3278_v32 }
 0xa37   : > { %v3255_v52 = vpop.xlane.xlu0 %3254 }
 0xa38   : > { %5629 = vpow2.f32 %v3287_v50  ;;  %v3277_v53 = vsub.f32 %v2972_v18, %v3255_v52 }
 0xa3a   : > { %v3285_v46 = vmul.f32 1.442695, %v3277_v53 }
 0xa3c   : > { %5631 = vpow2.f32 %v3285_v46  ;;  %v3264_v63 = vpop.xlane.xlu0 %3263 }
 0xa3d   : > { %v3280_v54 = vsub.f32 %v3068_v5, %v3264_v63  ;;  %v3261_v55 = vpop.xlane.xlu1 %3260 }
 0xa3e   : > { %v3279_v56 = vsub.f32 %v3063_v13, %v3261_v55 }
 0xa3f   : > { %v3291_v45 = vmul.f32 1.442695, %v3280_v54 }
 0xa40   : > { %v3289_v57 = vmul.f32 1.442695, %v3279_v56 }
 0xa41   : > { %5633 = vpow2.f32 %v3291_v45  ;;  %v3267_v58 = vpop.xlane.xlu1 %3266 }
 0xa42   : > { %v6538_v60 = vpop.eup %5629  ;;  %5635 = vpow2.f32 %v3289_v57  ;;  %v3281_v20 = vsub.f32 %v3154_v14, %v3267_v58 }
 0xa43   : > { %v3304_v61 = vsel %vm762_vm3, %v6538_v60, 0.0 }
 0xa44   : > { %3305 = vadd.xlane.f32.xlu1 %v3304_v61  ;;  %v3293_v38 = vmul.f32 1.442695, %v3281_v20 }
 0xa45   : > { %v3270_v62 = vpop.xlane.xlu1 %3269  ;;  %v3273_v1 = vpop.xlane.xlu0 %3272 }
 0xa46   : > { %v6542_v3 = vpop.eup %5631  ;;  %v3282_v9 = vsub.f32 %v3159_v17, %v3270_v62  ;;  %v3283_v31 = vsub.f32 %v3245_v40, %v3273_v1 }
 0xa47   : > { %v3301_v23 = vsel %vm762_vm3, %v6542_v3, 0.0 }
 0xa48   : > { %v3295_v21 = vmul.f32 1.442695, %v3282_v9  ;;  %3302 = vadd.xlane.f32.xlu1 %v3301_v23  ;;  %v3297_v5 = vmul.f32 1.442695, %v3283_v31 }
 0xa49   : > { %v5515_v18 = vpop.permute.xlu1 %5514  ;;  %v3276_v11 = vpop.xlane.xlu0 %3275 }
 0xa4a   : > { %5637 = vpow2.f32 %v3295_v21  ;;  %v5517_v16 = vunpack.i.h.bf16 %v5515_v18  ;;  %v5516_v26 = vunpack.i.l.bf16 %v5515_v18  ;;  %v3284_v28 = vsub.f32 %v3250_v43, %v3276_v11 }
 0xa4b   : > { %v6546_v7 = vpop.eup %5633  ;;  %5639 = vpow2.f32 %v3293_v38 }
 0xa4c   : > { %v5268_v12 = vpack.c.bf16 %v5517_v16, %v5516_v26  ;;  %v3299_v13 = vmul.f32 1.442695, %v3284_v28  ;;  %v3310_v0 = vsel %vm762_vm3, %v6546_v7, 0.0  ;;  %v5636_v14 = vpop.eup %5635 }
 0xa4d   : > { %3311 = vadd.xlane.f32.xlu0 %v3310_v0  ;;  %v3307_v15 = vsel %vm762_vm3, %v5636_v14, 0.0 }
 0xa4e   : > { %5641 = vpow2.f32 %v3299_v13  ;;  %5269 = vmatprep.subr.bf16.mxu0 %v5268_v12 }
 0xa4f   : > { %5271 = vmatpush3.bf16.msra.mxu0 %v5268_v12  ;;  %5643 = vpow2.f32 %v3297_v5 }
 0xa51   : > { %3308 = vadd.xlane.f32.xlu0 %v3307_v15 }
 0xa54   : > { %v6551_v17 = vpop.eup %5637 }
 0xa55   : > { %v6553_v22 = vpop.eup %5639  ;;  %v3316_v27 = vsel %vm762_vm3, %v6551_v17, 0.0 }
 0xa56   : > { %3317 = vadd.xlane.f32.xlu1 %v3316_v27  ;;  %v3313_v40 = vsel %vm762_vm3, %v6553_v22, 0.0 }
 0xa58   : > { %v6557_v29 = vpop.eup %5641 }
 0xa59   : > { %v3322_v43 = vsel %vm762_vm3, %v6557_v29, 0.0  ;;  %v6563_v41 = vpop.eup %5643 }
 0xa5a   : > { %3314 = vadd.xlane.f32.xlu1 %v3313_v40  ;;  %3323 = vadd.xlane.f32.xlu0 %v3322_v43  ;;  %v3319_v42 = vsel %vm762_vm3, %v6563_v41, 0.0  ;;  %v5838_v40 = vmov 1983009808  }
 0xa5b   : > { %v3740_v43 = vunpack.c.l.s4 %v5838_v40 }
 0xa5e   : > { %3320 = vadd.xlane.f32.xlu0 %v3319_v42  ;;  %v5839_v42 = vmov 1934713408  }
 0xa6b   : > { %5524 = vrot.lane.b32.xlu1 %v6104_v30, %s5834_s9 }
 0xa6f   : > { %5529 = vrot.lane.b32.xlu1 %v6116_v34, %s5834_s9 }
 0xa73   : > { %2017 = vrot.lane.b32.xlu1 %v6406_v35, %s5835_s10 }
 0xa74   : > { %5519 = vrot.lane.b32.xlu0 %v6092_v25, %s5834_s9  ;;  %s5753_s9 = scalar_lea.vmem %s5752_s5, 512 }
 0xa77   : > { %2021 = vrot.lane.b32.xlu1 %v6410_v19, %s5835_s10 }
 0xa78   : > { %2015 = vrot.lane.b32.xlu0 %v6408_v24, %s5835_s10 }
 0xa7b   : > { %2025 = vrot.lane.b32.xlu1 %v6414_v37, %s5835_s10 }
 0xa7c   : > { %2019 = vrot.lane.b32.xlu0 %v6412_v36, %s5835_s10 }
 0xa7f   : > { %2029 = vrot.lane.b32.xlu1 %v6418_v44, %s5835_s10 }
 0xa80   : > { %2023 = vrot.lane.b32.xlu0 %v6416_v39, %s5835_s10 }
 0xa83   : > { %2858 = vrot.lane.b32.xlu1 %v6512_v59, %s5836_s24 }
 0xa84   : > { %2027 = vrot.lane.b32.xlu0 %v6420_v47, %s5835_s10 }
 0xa87   : > { %2862 = vrot.lane.b32.xlu1 %v6516_v51, %s5836_s24 }
 0xa88   : > { %2856 = vrot.lane.b32.xlu0 %v6514_v4, %s5836_s24 }
 0xa8b   : > { %2866 = vrot.lane.b32.xlu1 %v6520_v6, %s5836_s24 }
 0xa8c   : > { %2860 = vrot.lane.b32.xlu0 %v6518_v2, %s5836_s24 }
 0xa8f   : > { %2870 = vrot.lane.b32.xlu1 %v6524_v33, %s5836_s24 }
 0xa90   : > { %2864 = vrot.lane.b32.xlu0 %v6522_v8, %s5836_s24 }
 0xa94   : > { %2868 = vrot.lane.b32.xlu0 %v6526_v10, %s5836_s24 }
 0xad1   : > { %v3306_v25 = vpop.xlane.xlu1 %3305 }
 0xad2   : > { %5645 = vrcp.f32 %v3306_v25  ;;  %v3755_v25 = vunpack.c.l.s4 %v5839_v42 }
 0xad5   : > { %v3303_v30 = vpop.xlane.xlu1 %3302 }
 0xad6   : > { %5647 = vrcp.f32 %v3303_v30 }
 0xada   : > { %v3312_v34 = vpop.xlane.xlu0 %3311 }
 0xadc   : > { %v5646_v24 = vpop.eup %5645 }
 0xadd   : > { %v3334_v37 = vmul.f32 %v5646_v24, %v6538_v60 }
 0xade   : > { %v3309_v35 = vpop.xlane.xlu0 %3308 }
 0xadf   : > { %5649 = vrcp.f32 %v3309_v35  ;;  %v3741_v35 = vunpack.c.0.s8 %v3740_v43 }
 0xae0   : > { %v5648_v19 = vpop.eup %5647 }
 0xae1   : > { %v3333_v36 = vmul.f32 %v5648_v19, %v6542_v3  ;;  %v3756_v19 = vunpack.c.0.s8 %v3755_v25 }
 0xae3   : > { %v3318_v39 = vpop.xlane.xlu1 %3317  ;;  %5092 = vmatprep.mubr.msk.f32.mxu0 %vm762_vm3, %v3333_v36 }
 0xae4   : > { %5093 = vmatmul.mubr.msk.f32.vlgmr.msra.gmra.mrb[34].mxu0 %vm762_vm3, %v3334_v37  ;;  %5651 = vrcp.f32 %v3318_v39 }
 0xae7   : > { %v3315_v44 = vpop.xlane.xlu1 %3314  ;;  %v3324_v47 = vpop.xlane.xlu0 %3323 }
 0xae8   : > { %5653 = vrcp.f32 %v3315_v44 }
 0xae9   : > { %v5650_v59 = vpop.eup %5649  ;;  %5655 = vrcp.f32 %v3312_v34 }
 0xaea   : > { %v3335_v4 = vmul.f32 %v5650_v59, %v5636_v14 }
 0xaeb   : > { %v5525_v51 = vpop.permute.xlu1 %5524  ;;  %v3321_v2 = vpop.xlane.xlu0 %3320 }
 0xaec   : > { %v5527_v6 = vunpack.i.h.bf16 %v5525_v51  ;;  %v5526_v8 = vunpack.i.l.bf16 %v5525_v51  ;;  %5657 = vrcp.f32 %v3321_v2  ;;  %5099 = vmatprep.mubr.msk.f32.mxu1 %vm762_vm3, %v3335_v4  ;;  %v5840_v4 = vmov 0.0  }
 0xaed   : > { %5659 = vrcp.f32 %v3324_v47 }
 0xaee   : > { %v5276_v33 = vpack.c.bf16 %v5527_v6, %v5526_v8  ;;  %v5652_v53 = vpop.eup %5651 }
 0xaef   : > { %v5530_v10 = vpop.permute.xlu1 %5529  ;;  %v5520_v48 = vpop.permute.xlu0 %5519  ;;  %v3338_v57 = vmul.f32 %v5652_v53, %v6551_v17 }
 0xaf0   : > { %v5532_v49 = vunpack.i.h.bf16 %v5530_v10  ;;  %v5531_v32 = vunpack.i.l.bf16 %v5530_v10  ;;  %v5522_v50 = vunpack.i.h.bf16 %v5520_v48  ;;  %v5521_v52 = vunpack.i.l.bf16 %v5520_v48  ;;  %5277 = vmatprep.subr.bf16.mxu0 %v5276_v33 }
 0xaf1   : > { %5279 = vmatpush3.bf16.msra.mxu0 %v5276_v33 }
 0xaf2   : > { %v5654_v46 = vpop.eup %5653  ;;  %v5272_v63 = vpack.c.bf16 %v5522_v50, %v5521_v52  ;;  %v5280_v58 = vpack.c.bf16 %v5532_v49, %v5531_v32 }
 0xaf3   : > { %v5656_v54 = vpop.eup %5655  ;;  %v2018_v55 = vpop.permute.xlu1 %2017  ;;  %v3337_v45 = vmul.f32 %v5654_v46, %v6553_v22 }
 0xaf4   : > { %v2016_v56 = vpop.permute.xlu0 %2015  ;;  %2041 = vst.msk [vmem:[#allocation2 + $0x8] sm:$0xff] %vm2039_vm4, %v2018_v55  ;;  %5273 = vmatprep.subr.bf16.mxu1 %v5272_v63  ;;  %v3336_v20 = vmul.f32 %v5656_v54, %v6546_v7 }
 0xaf5   : > { %2040 = vst.msk [vmem:[#allocation2] sm:$0xff] %vm2039_vm4, %v2016_v56  ;;  %5275 = vmatpush3.bf16.msra.mxu1 %v5272_v63  ;;  %5106 = vmatprep.mubr.msk.f32.mxu0 %vm762_vm3, %v3337_v45 }
 0xaf6   : > { %v5658_v60 = vpop.eup %5657  ;;  %5107 = vmatmul.mubr.msk.f32.vlgmr.msra.gmra.mrb[36].mxu0 %vm762_vm3, %v3338_v57  ;;  %5281 = vmatprep.subr.bf16.mxu1 %v5280_v58 }
 0xaf7   : > { %v5660_v61 = vpop.eup %5659  ;;  %v2022_v62 = vpop.permute.xlu1 %2021  ;;  %v3339_v3 = vmul.f32 %v5658_v60, %v6563_v41  ;;  %v3742_v41 = vlaneseq }
 0xaf8   : > { %v2020_v1 = vpop.permute.xlu0 %2019  ;;  %2043 = vst.msk [vmem:[#allocation2 + $0x18] sm:$0xff] %vm2039_vm4, %v2022_v62  ;;  %5100 = vmatmul.mubr.msk.f32.vlgmr.msra.gmra.mrb[30].mxu1 %vm762_vm3, %v3336_v20  ;;  %v3340_v9 = vmul.f32 %v5660_v61, %v6557_v29 }
 0xaf9   : > { %2042 = vst.msk [vmem:[#allocation2 + $0x10] sm:$0xff] %vm2039_vm4, %v2020_v1  ;;  %5283 = vmatpush3.bf16.msra.mxu1 %v5280_v58  ;;  %5113 = vmatprep.mubr.msk.f32.mxu1 %vm762_vm3, %v3339_v3  ;;  %v6622_v24 = vshrl.u32 %v3742_v41, 7  ;;  %vm6904_vm9 = vcmp.lt.s32.totalorder %v3742_v41, 512 }
 0xafb   : > { %v2026_v38 = vpop.permute.xlu1 %2025  ;;  %v6626_v36 = vsub.s32 %v3741_v35, %v6622_v24  ;;  %v6629_v37 = vsub.s32 %v3756_v19, %v6622_v24 }
 0xafc   : > { %v2024_v23 = vpop.permute.xlu0 %2023  ;;  %2045 = vst.msk [vmem:[#allocation2 + $0x28] sm:$0xff] %vm2039_vm4, %v2026_v38  ;;  %5114 = vmatmul.mubr.msk.f32.vlgmr.msra.gmra.mrb[32].mxu1 %vm762_vm3, %v3340_v9 }
 0xafd   : > { %2044 = vst.msk [vmem:[#allocation2 + $0x20] sm:$0xff] %vm2039_vm4, %v2024_v23 }
 0xaff   : > { %v2030_v21 = vpop.permute.xlu1 %2029 }
 0xb00   : > { %v2028_v31 = vpop.permute.xlu0 %2027  ;;  %2047 = vst.msk [vmem:[#allocation2 + $0x38] sm:$0xff] %vm2039_vm4, %v2030_v21 }
 0xb01   : > { %2046 = vst.msk [vmem:[#allocation2 + $0x30] sm:$0xff] %vm2039_vm4, %v2028_v31 }
 0xb03   : > { %v2859_v18 = vpop.permute.xlu1 %2858 }
 0xb04   : > { %v2857_v11 = vpop.permute.xlu0 %2856  ;;  %2882 = vst.msk [vmem:[#allocation2 + $0x8] sm:$0xff] %vm2880_vm5, %v2859_v18 }
 0xb05   : > { %2881 = vst.msk [vmem:[#allocation2] sm:$0xff] %vm2880_vm5, %v2857_v11 }
 0xb07   : > { %v2863_v16 = vpop.permute.xlu1 %2862 }
 0xb08   : > { %v2861_v26 = vpop.permute.xlu0 %2860  ;;  %2884 = vst.msk [vmem:[#allocation2 + $0x18] sm:$0xff] %vm2880_vm5, %v2863_v16 }
 0xb09   : > { %2883 = vst.msk [vmem:[#allocation2 + $0x10] sm:$0xff] %vm2880_vm5, %v2861_v26 }
 0xb0b   : > { %v2867_v28 = vpop.permute.xlu1 %2866 }
 0xb0c   : > { %v2865_v7 = vpop.permute.xlu0 %2864  ;;  %2886 = vst.msk [vmem:[#allocation2 + $0x28] sm:$0xff] %vm2880_vm5, %v2867_v28 }
 0xb0d   : > { %2885 = vst.msk [vmem:[#allocation2 + $0x20] sm:$0xff] %vm2880_vm5, %v2865_v7 }
 0xb0f   : > { %v2871_v5 = vpop.permute.xlu1 %2870 }
 0xb10   : > { %v2869_v12 = vpop.permute.xlu0 %2868  ;;  %2888 = vst.msk [vmem:[#allocation2 + $0x38] sm:$0xff] %vm2880_vm5, %v2871_v5 }
 0xb11   : > { %2887 = vst.msk [vmem:[#allocation2 + $0x30] sm:$0xff] %vm2880_vm5, %v2869_v12 }
 0xbb7   : > { %v5094_v13 = vpop.f32.mrb[34].mxu0 }
 0xbb8   : > { %3699 = vrot.lane.b32.xlu1 %v5094_v13, %s5837_s28  ;;  %v3419_v0 = vpop.f32.mrb[35].mxu0 }
 0xbb9   : > { %3697 = vrot.lane.b32.xlu0 %v3419_v0, %s5837_s28 }
 0xbc9   : > { %v5108_v14 = vpop.f32.mrb[36].mxu0 }
 0xbca   : > { %v3593_v15 = vpop.f32.mrb[37].mxu0 }
 0xbcb   : > { %v5101_v17 = vpop.f32.mrb[30].mxu1 }
 0xbcc   : > { %3703 = vrot.lane.b32.xlu1 %v5101_v17, %s5837_s28  ;;  %v3506_v22 = vpop.f32.mrb[31].mxu1 }
 0xbcd   : > { %3701 = vrot.lane.b32.xlu0 %v3506_v22, %s5837_s28 }
 0xbcf   : > { %v5115_v27 = vpop.f32.mrb[32].mxu1 }
 0xbd0   : > { %3707 = vrot.lane.b32.xlu1 %v5108_v14, %s5837_s28  ;;  %v3680_v29 = vpop.f32.mrb[33].mxu1 }
 0xbd1   : > { %3705 = vrot.lane.b32.xlu0 %v3593_v15, %s5837_s28 }
 0xbd4   : > { %3711 = vrot.lane.b32.xlu1 %v5115_v27, %s5837_s28 }
 0xbd5   : > { %3709 = vrot.lane.b32.xlu0 %v3680_v29, %s5837_s28 }
 0xc2a   : > { %v3700_v30 = vpop.permute.xlu1 %3699 }
 0xc2b   : > { %3723 = vst.msk [vmem:[#allocation2 + $0x8] sm:$0xff] %vm3721_vm6, %v3700_v30  ;;  %v3698_v34 = vpop.permute.xlu0 %3697 }
 0xc2c   : > { %3722 = vst.msk [vmem:[#allocation2] sm:$0xff] %vm3721_vm6, %v3698_v34 }
 0xc32   : > { %v3731_v39 = vld [vmem:[#allocation2 + $0x8] sm:$0xff] }
 0xc33   : > { %v3794_v44 = vrot.slane %v3731_v39, %v6626_v36  ;;  %v3730_v47 = vld [vmem:[#allocation2] sm:$0xff]  ;;  %v3787_v10 = vcombine.high %v3731_v39, %v5840_v4 }
 0xc34   : > { %v3745_v6 = vrot.slane %v3730_v47, %v6626_v36  ;;  %v3738_v62 = vcombine.high %v3730_v47, %v5840_v4 }
 0xc35   : > { %v6633_v59 = vrot.slane %v3794_v44, %v6629_v37  ;;  %v3802_v2 = vcombine.high %v3794_v44, %v5840_v4  ;;  %v3801_v52 = vrot.slane %v3787_v10, %v6626_v36 }
 0xc36   : > { %v6642_v33 = vrot.slane %v3745_v6, %v6629_v37  ;;  %v3753_v50 = vcombine.high %v3745_v6, %v5840_v4  ;;  %v3752_v21 = vrot.slane %v3738_v62, %v6626_v36 }
 0xc37   : > { %v3832_v51 = vcombine.high %v6633_v59, %v5840_v4  ;;  %v3816_v8 = vrot.slane %v3802_v2, %v6629_v37  ;;  %v6656_v54 = vrot.slane %v3801_v52, %v6629_v37  ;;  %v3817_v60 = vcombine.high %v3801_v52, %v5840_v4 }
 0xc38   : > { %v3783_v32 = vcombine.high %v6642_v33, %v5840_v4  ;;  %v3767_v63 = vrot.slane %v3753_v50, %v6629_v37  ;;  %v6703_v13 = vrot.slane %v3752_v21, %v6629_v37  ;;  %v3768_v35 = vcombine.high %v3752_v21, %v5840_v4 }
 0xc39   : > { %4230 = vrot.lane.b32.xlu0 %v3832_v51, %s5841_s21  ;;  %v3834_v57 = vcombine.high %v6656_v54, %v5840_v4  ;;  %v6676_v3 = vrot.slane %v3817_v60, %v6629_v37  ;;  %v3833_v16 = vcombine.high %v3816_v8, %v5840_v4 }
 0xc3a   : > { %v3784_v27 = vcombine.high %v3767_v63, %v5840_v4  ;;  %v3785_v34 = vcombine.high %v6703_v13, %v5840_v4  ;;  %v3782_v50 = vrot.slane %v3768_v35, %v6629_v37 }
 0xc3d   : > { %4246 = vrot.lane.b32.xlu0 %v3816_v8, %s5825_s12 }
 0xc3e   : > { %v3704_v48 = vpop.permute.xlu1 %3703 }
 0xc3f   : > { %3725 = vst.msk [vmem:[#allocation2 + $0x18] sm:$0xff] %vm3721_vm6, %v3704_v48  ;;  %v3702_v49 = vpop.permute.xlu0 %3701 }
 0xc40   : > { %3724 = vst.msk [vmem:[#allocation2 + $0x10] sm:$0xff] %vm3721_vm6, %v3702_v49 }
 0xc41   : > { %4134 = vrot.lane.b32.xlu0 %v3783_v32, %s5841_s21 }
 0xc42   : > { %v3708_v53 = vpop.permute.xlu1 %3707 }
 0xc43   : > { %3727 = vst.msk [vmem:[#allocation2 + $0x28] sm:$0xff] %vm3721_vm6, %v3708_v53  ;;  %v3706_v46 = vpop.permute.xlu0 %3705 }
 0xc44   : > { %3726 = vst.msk [vmem:[#allocation2 + $0x20] sm:$0xff] %vm3721_vm6, %v3706_v46 }
 0xc45   : > { %4150 = vrot.lane.b32.xlu0 %v3767_v63, %s5825_s12 }
 0xc46   : > { %v3712_v55 = vpop.permute.xlu1 %3711  ;;  %v3733_v56 = vld [vmem:[#allocation2 + $0x18] sm:$0xff] }
 0xc47   : > { %3729 = vst.msk [vmem:[#allocation2 + $0x38] sm:$0xff] %vm3721_vm6, %v3712_v55  ;;  %v3710_v45 = vpop.permute.xlu0 %3709  ;;  %v3892_v58 = vrot.slane %v3733_v56, %v6626_v36  ;;  %v6666_v20 = vld [vmem:[#allocation2 + $0x10] sm:$0xff]  ;;  %v3885_v31 = vcombine.high %v3733_v56, %v5840_v4 }
 0xc48   : > { %3728 = vst.msk [vmem:[#allocation2 + $0x30] sm:$0xff] %vm3721_vm6, %v3710_v45  ;;  %v3843_v38 = vrot.slane %v6666_v20, %v6626_v36 }
 0xc49   : > { %4278 = vrot.lane.b32.xlu0 %v3834_v57, %s5841_s21  ;;  %v6670_v61 = vrot.slane %v3892_v58, %v6629_v37  ;;  %v3900_v9 = vcombine.high %v3892_v58, %v5840_v4  ;;  %v3899_v0 = vrot.slane %v3885_v31, %v6626_v36 }
 0xc4a   : > { %v6681_v23 = vld [vmem:[#allocation2 + $0x28] sm:$0xff]  ;;  %v6693_v26 = vrot.slane %v3843_v38, %v6629_v37  ;;  %v3851_v29 = vcombine.high %v3843_v38, %v5840_v4  ;;  %v3836_v38 = vcombine.high %v6666_v20, %v5840_v4 }
 0xc4b   : > { %v3930_v1 = vcombine.high %v6670_v61, %v5840_v4  ;;  %v6689_v11 = vrot.slane %v3900_v9, %v6629_v37  ;;  %v3983_v28 = vcombine.high %v6681_v23, %v5840_v4  ;;  %v3734_v40 = vld [vmem:[#allocation2 + $0x20] sm:$0xff]  ;;  %v6732_v39 = vrot.slane %v3899_v0, %v6629_v37 }
 0xc4c   : > { %v3881_v22 = vcombine.high %v6693_v26, %v5840_v4  ;;  %v3934_v47 = vcombine.high %v3734_v40, %v5840_v4  ;;  %v3865_v2 = vrot.slane %v3851_v29, %v6629_v37  ;;  %v3915_v57 = vcombine.high %v3899_v0, %v5840_v4 }
 0xc4d   : > { %4232 = vrot.lane.b32.xlu1 %v3930_v1, %s5841_s21  ;;  %4294 = vrot.lane.b32.xlu0 %v6676_v3, %s5825_s12  ;;  %v3997_v14 = vrot.slane %v3983_v28, %v6626_v36  ;;  %v3932_v45 = vcombine.high %v6732_v39, %v5840_v4  ;;  %v3990_v28 = vrot.slane %v6681_v23, %v6626_v36 }
 0xc4e   : > { %v3737_v18 = vld [vmem:[#allocation2 + $0x38] sm:$0xff]  ;;  %v3948_v48 = vrot.slane %v3934_v47, %v6626_v36  ;;  %v3850_v20 = vrot.slane %v3836_v38, %v6626_v36  ;;  %v3882_v23 = vcombine.high %v3865_v2, %v5840_v4  ;;  %v5842_v38 = vmov 1966171168  }
 0xc4f   : > { %v3736_v7 = vld [vmem:[#allocation2 + $0x30] sm:$0xff]  ;;  %v4088_v5 = vrot.slane %v3737_v18, %v6626_v36  ;;  %v6719_v42 = vrot.slane %v3997_v14, %v6629_v37  ;;  %v4013_v25 = vcombine.high %v3997_v14, %v5840_v4  ;;  %v4081_v51 = vcombine.high %v3737_v18, %v5840_v4 }
 0xc50   : > { %v4039_v12 = vrot.slane %v3736_v7, %v6626_v36  ;;  %v4032_v10 = vcombine.high %v3736_v7, %v5840_v4  ;;  %v6763_v46 = vrot.slane %v3948_v48, %v6629_v37  ;;  %v3964_v55 = vcombine.high %v3948_v48, %v5840_v4 }
 0xc51   : > { %4248 = vrot.lane.b32.xlu1 %v6689_v11, %s5825_s12  ;;  %4262 = vrot.lane.b32.xlu0 %v3833_v16, %s5824_s11  ;;  %v6708_v15 = vrot.slane %v4088_v5, %v6629_v37  ;;  %v4096_v17 = vcombine.high %v4088_v5, %v5840_v4  ;;  %v6735_v44 = vrot.slane %v4013_v25, %v6629_v37 }
 0xc52   : > { %v6716_v43 = vrot.slane %v4039_v12, %v6629_v37  ;;  %v4047_v19 = vcombine.high %v4039_v12, %v5840_v4  ;;  %v4095_v49 = vrot.slane %v4081_v51, %v6626_v36  ;;  %v4046_v53 = vrot.slane %v4032_v10, %v6626_v36 }
 0xc53   : > { %v6723_v30 = vrot.slane %v4096_v17, %v6629_v37  ;;  %v6752_v32 = vcombine.high %v6735_v44, %v5840_v4  ;;  %v3978_v62 = vrot.slane %v3964_v55, %v6629_v37  ;;  %v3929_v18 = vrot.slane %v3915_v57, %v6629_v37 }
 0xc54   : > { %v6741_v6 = vrot.slane %v4047_v19, %v6629_v37  ;;  %v6766_v63 = vrot.slane %v4095_v49, %v6629_v37  ;;  %v4111_v56 = vcombine.high %v4095_v49, %v5840_v4  ;;  %v6774_v58 = vrot.slane %v4046_v53, %v6629_v37 }
 0xc55   : > { %4136 = vrot.lane.b32.xlu1 %v3881_v22, %s5841_s21  ;;  %4166 = vrot.lane.b32.xlu0 %v3784_v27, %s5824_s11  ;;  %v6745_v8 = vcombine.high %v6723_v30, %v5840_v4  ;;  %v4062_v60 = vcombine.high %v4046_v53, %v5840_v4  ;;  %v3982_v21 = vcombine.high %v3978_v62, %v5840_v4 }
 0xc56   : > { %v6759_v52 = vcombine.high %v6741_v6, %v5840_v4  ;;  %v4125_v1 = vrot.slane %v4111_v56, %v6629_v37  ;;  %v3835_v16 = vcombine.high %v6676_v3, %v5840_v4  ;;  %v3931_v5 = vcombine.high %v6689_v11, %v5840_v4 }
 0xc57   : > { %v6782_v9 = vrot.slane %v4062_v60, %v6629_v37  ;;  %v3786_v12 = vcombine.high %v3782_v50, %v5840_v4  ;;  %v6804_v0 = vrot.slane %v3990_v28, %v6629_v37  ;;  %v6809_v3 = vrot.slane %v3850_v20, %v6629_v37 }
 0xc58   : > { %v6788_v31 = vcombine.high %v4125_v1, %v5840_v4  ;;  %v3998_v17 = vcombine.high %v3990_v28, %v5840_v4  ;;  %v3941_v11 = vrot.slane %v3734_v40, %v6626_v36  ;;  %v3866_v29 = vcombine.high %v3850_v20, %v5840_v4 }
 0xc59   : > { %4152 = vrot.lane.b32.xlu1 %v3865_v2, %s5825_s12  ;;  %4182 = vrot.lane.b32.xlu0 %v3785_v34, %s5841_s21  ;;  %v4080_v7 = vcombine.high %v6782_v9, %v5840_v4  ;;  %v4028_v14 = vcombine.high %v6804_v0, %v5840_v4  ;;  %v3883_v22 = vcombine.high %v6809_v3, %v5840_v4 }
 0xc5a   : > { %v4012_v27 = vrot.slane %v3998_v17, %v6629_v37  ;;  %v6823_v25 = vrot.slane %v3941_v11, %v6629_v37  ;;  %v3880_v36 = vrot.slane %v3866_v29, %v6629_v37  ;;  %v3949_v34 = vcombine.high %v3941_v11, %v5840_v4 }
 0xc5b   : > { %v3933_v35 = vcombine.high %v3929_v18, %v5840_v4  ;;  %v4030_v51 = vcombine.high %v6719_v42, %v5840_v4  ;;  %v4126_v2 = vcombine.high %v6708_v15, %v5840_v4  ;;  %v4077_v10 = vcombine.high %v6716_v43, %v5840_v4 }
 0xc5c   : > { %v3979_v40 = vcombine.high %v6823_v25, %v5840_v4  ;;  %v3963_v19 = vrot.slane %v3949_v34, %v6629_v37  ;;  %v3884_v47 = vcombine.high %v3880_v36, %v5840_v4  ;;  %v4029_v37 = vcombine.high %v4012_v27, %v5840_v4 }
 0xc5d   : > { %4280 = vrot.lane.b32.xlu1 %v3932_v45, %s5841_s21  ;;  %4198 = vrot.lane.b32.xlu0 %v3782_v50, %s5825_s12  ;;  %v3981_v49 = vcombine.high %v6763_v46, %v5840_v4 }
 0xc5e   : > { %v3980_v48 = vcombine.high %v3963_v19, %v5840_v4 }
 0xc61   : > { %4296 = vrot.lane.b32.xlu1 %v3929_v18, %s5825_s12  ;;  %4310 = vrot.lane.b32.xlu0 %v3835_v16, %s5824_s11 }
 0xc65   : > { %4264 = vrot.lane.b32.xlu1 %v3931_v5, %s5824_s11  ;;  %4214 = vrot.lane.b32.xlu0 %v3786_v12, %s5824_s11 }
 0xc69   : > { %4168 = vrot.lane.b32.xlu1 %v3882_v23, %s5824_s11  ;;  %4234 = vrot.lane.b32.xlu0 %v4028_v14, %s5841_s21 }
 0xc6d   : > { %4184 = vrot.lane.b32.xlu1 %v3883_v22, %s5841_s21  ;;  %4250 = vrot.lane.b32.xlu0 %v4012_v27, %s5825_s12 }
 0xc71   : > { %4200 = vrot.lane.b32.xlu1 %v3880_v36, %s5825_s12  ;;  %4138 = vrot.lane.b32.xlu0 %v3979_v40, %s5841_s21 }
 0xc75   : > { %4312 = vrot.lane.b32.xlu1 %v3933_v35, %s5824_s11  ;;  %4154 = vrot.lane.b32.xlu0 %v3963_v19, %s5825_s12 }
 0xc79   : > { %4216 = vrot.lane.b32.xlu1 %v3884_v47, %s5824_s11  ;;  %4282 = vrot.lane.b32.xlu0 %v4030_v51, %s5841_s21 }
 0xc7d   : > { %4236 = vrot.lane.b32.xlu1 %v4126_v2, %s5841_s21  ;;  %4298 = vrot.lane.b32.xlu0 %v6735_v44, %s5825_s12  ;;  %v4079_v44 = vcombine.high %v6774_v58, %v5840_v4 }
 0xc81   : > { %4252 = vrot.lane.b32.xlu1 %v6723_v30, %s5825_s12  ;;  %4266 = vrot.lane.b32.xlu0 %v4029_v37, %s5824_s11  ;;  %v4128_v30 = vcombine.high %v6766_v63, %v5840_v4 }
 0xc85   : > { %4140 = vrot.lane.b32.xlu1 %v4077_v10, %s5841_s21  ;;  %4170 = vrot.lane.b32.xlu0 %v3980_v48, %s5824_s11 }
 0xc89   : > { %4156 = vrot.lane.b32.xlu1 %v6741_v6, %s5825_s12  ;;  %4186 = vrot.lane.b32.xlu0 %v3981_v49, %s5841_s21 }
 0xc8d   : > { %4284 = vrot.lane.b32.xlu1 %v4128_v30, %s5841_s21  ;;  %4202 = vrot.lane.b32.xlu0 %v3978_v62, %s5825_s12 }
 0xc91   : > { %4300 = vrot.lane.b32.xlu1 %v4125_v1, %s5825_s12  ;;  %4218 = vrot.lane.b32.xlu0 %v3982_v21, %s5824_s11  ;;  %v4391_v21 = vunpack.c.l.s4 %v5842_v38 }
 0xc93   : > { %v4392_v28 = vunpack.c.0.s8 %v4391_v21 }
 0xc95   : > { %4268 = vrot.lane.b32.xlu1 %v6745_v8, %s5824_s11  ;;  %4314 = vrot.lane.b32.xlu0 %v6752_v32, %s5824_s11  ;;  %v6896_v22 = vsub.s32 %v4392_v28, %v6622_v24 }
 0xc99   : > { %4172 = vrot.lane.b32.xlu1 %v6759_v52, %s5824_s11 }
 0xc9d   : > { %4188 = vrot.lane.b32.xlu1 %v4079_v44, %s5841_s21 }
 0xca1   : > { %4204 = vrot.lane.b32.xlu1 %v6782_v9, %s5825_s12 }
 0xca5   : > { %4220 = vrot.lane.b32.xlu1 %v4080_v7, %s5824_s11 }
 0xca9   : > { %4316 = vrot.lane.b32.xlu1 %v6788_v31, %s5824_s11  ;;  %s6909_s11 = scalar_lea.vmem [#allocation9], %s4616_s23 }
 0xcaa   : > { %s4511_s6 = sshll.u32 %s6909_s11, 4  ;;  %s6984_s6 = int_to_ptr.vmem [resolvable:$true] %s4511_s6 }
 0xcab   : > { %v4231_v6 = vpop.permute.xlu0 %4230  ;;  %s5747_s29 = scalar_lea.vmem %s6984_s6, 256  ;;  %p5754_p7 = scmp.lt.s32.totalorder %s6984_s6, %s5752_s5 }
 0xcac   : > { %v4348_v20 = vsel %vm267_vm0, %v6633_v59, %v4231_v6  ;;  %p5748_p8 = scmp.ne.s32.totalorder %s6984_s6, %s5747_s29  ;;  %p5755_p9 = scmp.lt.s32.totalorder %s5753_s9, %s5747_s29 }
 0xcae   : > { %p5749_p2 = pnand %p5748_p8, %p7055_p0  ;;  %p5756_p12 = por %p5755_p9, %p5754_p7 }
 0xcaf   : > { %v4247_v8 = vpop.permute.xlu0 %4246 }
 0xcb0   : > { %v4352_v12 = vsel %vm4326_vm7, %v4348_v20, %v4247_v8  ;;  %p5750_p3 = pneg %p5749_p2 }
 0xcb2   : > { %p5757_p1 = pnand %p5756_p12, %p5750_p3 }
 0xcb3   : > { %v4135_v50 = vpop.permute.xlu0 %4134 }
 0xcb4   : > { %v4322_v23 = vsel %vm267_vm0, %v6642_v33, %v4135_v50 }
 0xcb7   : > { %v4151_v32 = vpop.permute.xlu0 %4150 }
 0xcb8   : > { %v4327_v17 = vsel %vm4326_vm7, %v4322_v23, %v4151_v32 }
 0xcbb   : > { %v4279_v53 = vpop.permute.xlu0 %4278 }
 0xcbc   : > { %v4360_v31 = vsel %vm267_vm0, %v6656_v54, %v4279_v53 }
 0xcbf   : > { %v4233_v55 = vpop.permute.xlu1 %4232  ;;  %v4295_v52 = vpop.permute.xlu0 %4294 }
 0xcc0   : > { %v4364_v18 = vsel %vm4326_vm7, %v4360_v31, %v4295_v52  ;;  %v4349_v6 = vsel %vm267_vm0, %v6670_v61, %v4233_v55 }
 0xcc3   : > { %v4249_v56 = vpop.permute.xlu1 %4248  ;;  %v4263_v45 = vpop.permute.xlu0 %4262 }
 0xcc4   : > { %v4356_v14 = vsel %vm4331_vm8, %v4352_v12, %v4263_v45  ;;  %v4353_v50 = vsel %vm4326_vm7, %v4349_v6, %v4249_v56 }
 0xcc7   : > { %v4137_v4 = vpop.permute.xlu1 %4136  ;;  %v4167_v57 = vpop.permute.xlu0 %4166 }
 0xcc8   : > { %v4332_v36 = vsel %vm4331_vm8, %v4327_v17, %v4167_v57  ;;  %v4323_v32 = vsel %vm267_vm0, %v6693_v26, %v4137_v4 }
 0xccb   : > { %v4153_v60 = vpop.permute.xlu1 %4152  ;;  %v4183_v62 = vpop.permute.xlu0 %4182 }
 0xccc   : > { %v4336_v54 = vsel %vm267_vm0, %v6703_v13, %v4183_v62 }
 0xccf   : > { %v4281_v1 = vpop.permute.xlu1 %4280  ;;  %v4199_v9 = vpop.permute.xlu0 %4198 }
 0xcd0   : > { %v4340_v11 = vsel %vm4326_vm7, %v4336_v54, %v4199_v9  ;;  %v4361_v49 = vsel %vm267_vm0, %v6732_v39, %v4281_v1  ;;  %v4328_v39 = vsel %vm4326_vm7, %v4323_v32, %v4153_v60 }
 0xcd3   : > { %v4297_v16 = vpop.permute.xlu1 %4296  ;;  %v4311_v7 = vpop.permute.xlu0 %4310 }
 0xcd4   : > { %v4368_v5 = vsel %vm4331_vm8, %v4364_v18, %v4311_v7  ;;  %v4365_v41 = vsel %vm4326_vm7, %v4361_v49, %v4297_v16 }
 0xcd5   : > { %v4389_v59 = vcombine.low %v4356_v14, %v4368_v5 }
 0xcd7   : > { %v4265_v27 = vpop.permute.xlu1 %4264  ;;  %v4215_v29 = vpop.permute.xlu0 %4214  ;;  %v4403_v34 = vrot.slane %v4389_v59, %v6896_v22 }
 0xcd8   : > { %v4344_v40 = vsel %vm4331_vm8, %v4340_v11, %v4215_v29  ;;  %v4357_v53 = vsel %vm4331_vm8, %v4353_v50, %v4265_v27 }
 0xcd9   : > { %v4388_v33 = vcombine.low %v4332_v36, %v4344_v40 }
 0xcdb   : > { %v4396_v13 = vrot.slane %v4388_v33, %v6896_v22  ;;  %v4169_v35 = vpop.permute.xlu1 %4168  ;;  %v4235_v19 = vpop.permute.xlu0 %4234 }
 0xcdc   : > { %v4333_v55 = vsel %vm4331_vm8, %v4328_v39, %v4169_v35  ;;  %v4350_v27 = vsel %vm267_vm0, %v6804_v0, %v4235_v19 }
 0xcdd   : > { %v4404_v47 = vcombine.low %v4396_v13, %v4403_v34 }
 0xcdf   : > { %v4411_v51 = vrot.slane %v4404_v47, %v6896_v22  ;;  %v4185_v2 = vpop.permute.xlu1 %4184  ;;  %v4251_v37 = vpop.permute.xlu0 %4250 }
 0xce0   : > { %v4337_v52 = vsel %vm267_vm0, %v6809_v3, %v4185_v2  ;;  %v4354_v36 = vsel %vm4326_vm7, %v4350_v27, %v4251_v37 }
 0xce1   : > { %4492 = vst.msk [vmem:[%s6909_s11] sm:$0xf] %vm6904_vm9, %v4411_v51 }
 0xce3   : > { %v4201_v10 = vpop.permute.xlu1 %4200  ;;  %v4139_v48 = vpop.permute.xlu0 %4138 }
 0xce4   : > { %v4341_v45 = vsel %vm4326_vm7, %v4337_v52, %v4201_v10  ;;  %v4324_v17 = vsel %vm267_vm0, %v6823_v25, %v4139_v48 }
 0xce7   : > { %v4313_v30 = vpop.permute.xlu1 %4312  ;;  %v4155_v44 = vpop.permute.xlu0 %4154 }
 0xce8   : > { %v4369_v8 = vsel %vm4331_vm8, %v4365_v41, %v4313_v30  ;;  %v4329_v59 = vsel %vm4326_vm7, %v4324_v17, %v4155_v44 }
 0xce9   : > { %v4413_v57 = vcombine.low %v4357_v53, %v4369_v8 }
 0xceb   : > { %v4217_v62 = vpop.permute.xlu1 %4216  ;;  %v4283_v61 = vpop.permute.xlu0 %4282  ;;  %v4427_v26 = vrot.slane %v4413_v57, %v6896_v22 }
 0xcec   : > { %v4345_v56 = vsel %vm4331_vm8, %v4341_v45, %v4217_v62  ;;  %v4362_v29 = vsel %vm267_vm0, %v6719_v42, %v4283_v61 }
 0xced   : > { %v4412_v1 = vcombine.low %v4333_v55, %v4345_v56 }
 0xcef   : > { %v4420_v4 = vrot.slane %v4412_v1, %v6896_v22  ;;  %v4237_v9 = vpop.permute.xlu1 %4236  ;;  %v4299_v38 = vpop.permute.xlu0 %4298 }
 0xcf0   : > { %v4366_v40 = vsel %vm4326_vm7, %v4362_v29, %v4299_v38  ;;  %v4351_v8 = vsel %vm267_vm0, %v6708_v15, %v4237_v9 }
 0xcf1   : > { %v4428_v3 = vcombine.low %v4420_v4, %v4427_v26 }
 0xcf3   : > { %v4435_v60 = vrot.slane %v4428_v3, %v6896_v22  ;;  %v4253_v21 = vpop.permute.xlu1 %4252  ;;  %v4267_v31 = vpop.permute.xlu0 %4266 }
 0xcf4   : > { %v4358_v13 = vsel %vm4331_vm8, %v4354_v36, %v4267_v31  ;;  %v4355_v32 = vsel %vm4326_vm7, %v4351_v8, %v4253_v21 }
 0xcf5   : > { %4493 = vst.msk [vmem:[%s6909_s11 + $0x4] sm:$0xf] %vm6904_vm9, %v4435_v60 }
 0xcf7   : > { %v4141_v18 = vpop.permute.xlu1 %4140  ;;  %v4171_v16 = vpop.permute.xlu0 %4170 }
 0xcf8   : > { %v4325_v30 = vsel %vm267_vm0, %v6716_v43, %v4141_v18 }
 0xcfb   : > { %v4157_v28 = vpop.permute.xlu1 %4156  ;;  %v4187_v7 = vpop.permute.xlu0 %4186 }
 0xcfc   : > { %v4338_v12 = vsel %vm267_vm0, %v6763_v46, %v4187_v7  ;;  %v4334_v46 = vsel %vm4331_vm8, %v4329_v59, %v4171_v16  ;;  %v4330_v6 = vsel %vm4326_vm7, %v4325_v30, %v4157_v28 }
 0xcff   : > { %v4285_v20 = vpop.permute.xlu1 %4284  ;;  %v4203_v5 = vpop.permute.xlu0 %4202 }
 0xd00   : > { %v4342_v23 = vsel %vm4326_vm7, %v4338_v12, %v4203_v5  ;;  %v4363_v50 = vsel %vm267_vm0, %v6766_v63, %v4285_v20 }
 0xd03   : > { %v4301_v14 = vpop.permute.xlu1 %4300  ;;  %v4219_v54 = vpop.permute.xlu0 %4218 }
 0xd04   : > { %v4346_v11 = vsel %vm4331_vm8, %v4342_v23, %v4219_v54  ;;  %v4367_v53 = vsel %vm4326_vm7, %v4363_v50, %v4301_v14 }
 0xd05   : > { %v4436_v33 = vcombine.low %v4334_v46, %v4346_v11 }
 0xd07   : > { %v4269_v34 = vpop.permute.xlu1 %4268  ;;  %v4315_v25 = vpop.permute.xlu0 %4314  ;;  %v4444_v0 = vrot.slane %v4436_v33, %v6896_v22 }
 0xd08   : > { %v4370_v35 = vsel %vm4331_vm8, %v4366_v40, %v4315_v25  ;;  %v4359_v39 = vsel %vm4331_vm8, %v4355_v32, %v4269_v34 }
 0xd09   : > { %v4437_v47 = vcombine.low %v4358_v13, %v4370_v35 }
 0xd0b   : > { %v4451_v19 = vrot.slane %v4437_v47, %v6896_v22  ;;  %v4173_v42 = vpop.permute.xlu1 %4172 }
 0xd0d   : > { %v4452_v51 = vcombine.low %v4444_v0, %v4451_v19 }
 0xd0f   : > { %v4459_v2 = vrot.slane %v4452_v51, %v6896_v22  ;;  %v4189_v10 = vpop.permute.xlu1 %4188 }
 0xd10   : > { %v4339_v48 = vsel %vm267_vm0, %v6774_v58, %v4189_v10  ;;  %v4335_v58 = vsel %vm4331_vm8, %v4330_v6, %v4173_v42 }
 0xd11   : > { %4494 = vst.msk [vmem:[%s6909_s11 + $0x8] sm:$0xf] %vm6904_vm9, %v4459_v2 }
 0xd13   : > { %v4205_v37 = vpop.permute.xlu1 %4204 }
 0xd14   : > { %v4343_v49 = vsel %vm4326_vm7, %v4339_v48, %v4205_v37 }
 0xd17   : > { %v4221_v41 = vpop.permute.xlu1 %4220 }
 0xd18   : > { %v4347_v44 = vsel %vm4331_vm8, %v4343_v49, %v4221_v41 }
 0xd19   : > { %v4460_v43 = vcombine.low %v4335_v58, %v4347_v44 }
 0xd1b   : > { %v4317_v52 = vpop.permute.xlu1 %4316  ;;  %v4468_v15 = vrot.slane %v4460_v43, %v6896_v22 }
 0xd1c   : > { %v4371_v45 = vsel %vm4331_vm8, %v4367_v53, %v4317_v52 }
 0xd1d   : > { %v4461_v57 = vcombine.low %v4359_v39, %v4371_v45 }
 0xd1f   : > { %v4475_v63 = vrot.slane %v4461_v57, %v6896_v22 }
 0xd21   : > { %v4476_v62 = vcombine.low %v4468_v15, %v4475_v63 }
 0xd23   : > { %v4483_v61 = vrot.slane %v4476_v62, %v6896_v22 }
 0xd25   : > { %4495 = vst.msk [vmem:[%s6909_s11 + $0xc] sm:$0xf] %vm6904_vm9, %v4483_v61 }
 0xd26   : > { %5760 = shalt.err (!%p5757_p1)
}
 0xd27   : > { %s5761_s10 = scalar_lea.hbm %s6981_s27, 256  ;;  %s5765_s21 = scalar_lea.hbm %s7037_s4, 512 }
 0xd28   : > { %p5762_p13 = scmp.ne.s32.totalorder %s6981_s27, %s5761_s10  ;;  %p5766_p4 = scmp.lt.u32.totalorder %s6981_s27, %s7037_s4 }
 0xd29   : > { %p5767_p5 = scmp.lt.u32.totalorder %s5765_s21, %s5761_s10  ;;  %p5769_p8 = scmp.lt.u32.totalorder %s5761_s10, %s6981_s27 }
 0xd2a   : > { %p5763_p6 = pnand %p5762_p13, %p7055_p0 }
 0xd2b   : > { %p5768_p11 = por %p5767_p5, %p5766_p4 }
 0xd2c   : > { %p5764_p10 = pneg %p5763_p6 }
 0xd2d   : > { %p5770_p2 = por %p5769_p8, %p5768_p11 }
 0xd2f   : > { %p5771_p3 = pnand %p5770_p2, %p5764_p10 }
 0xd31   : > { %5774 = shalt.err (!%p5771_p3)
}
 0xd32   : > { %s5844_s30 = smov 4  }
 0xd33   : > { %5294 = dma.vmem_to_hbm [thread:$0]  (%p7055_p0), %s6984_s6, 256, %s6981_s27, %s4497_s20, %s5825_s12, %s5825_s12, %s5844_s30  }
 0xd34 PF: > { %s4526_s25 = sand.u32 1, %s5805_s15   ;;  %p7056_p7 = scmp.ne.s32.totalorder %s7042_s22, 0 }
 0xd35   : > { %p7057_p9 = scmp.ge.s32.totalorder %s5817_s18, 2  ;;  %s4527_s7 = scalar_lea.sflag [#allocation5], %s4526_s25 }
 0xd37   : > { %p5308_p12 = pnand %p7057_p9, %p7056_p7 }
 0xd39   : > { %5800 = dma.done.wait (!%p5308_p12), %s4527_s7, 256  }
 0xd3a   : > { %5802 = vsyncadd (!%p5308_p12), %s4527_s7, 4294967040  ;;  %p18_p1 = scmp.ge.s32.totalorder %s5986_s26, 4   ;;  %s7058_s15 = smov %s5809_s16 }
 0xd3b   : > { %s7059_s16 = smov %s5813_s17  ;;  %s7060_s17 = smov %s6002_s14 }
 0xd3c   : > { %s7061_s18 = smov %s5986_s26  ;;  %20 = sbr.rel (!%p18_p1) target bundleno = 6 (0x6), region = 89 }
 0xd43   :  { %4532 = vsyncpa [#allocation4], 1 }
 0xd44   :  { %4534 = vsyncpa [#allocation4 + $0x1], 1 }
 0xd45   :  { %4535 = vsyncpa [#allocation7], 1 }
 0xd46   :  { %4536 = vsyncpa [#allocation5], 1 }
 0xd47   :  { %4538 = vsyncpa [#allocation5 + $0x1], 1 }

</bundles_post_ra>
